<compile_context>
chip_gen: v7x
topology: tpu7x:2x2x1
jax: 0.10.0
libtpu: 0.0.40
codegen_flags: <defaults>
</compile_context>

<pallas_src>
import functools
import math

import jax
import jax.numpy as jnp
from jax import lax
from jax.experimental import pallas as pl
from jax.experimental.pallas import tpu as pltpu

# Finite "-inf" so the online-softmax recurrence stays NaN-free. Fully-masked
# rows return the uniform average of V (PyTorch's -inf fill would give NaN).
_NEG_INF = -1e30


def _round_up(x, m):
    return ((x + m - 1) // m) * m


def _sdpa_kernel(*refs, scaling, has_mask, mask_kv_tail, k_len, tile_k):
    if has_mask:
        q_ref, k_ref, v_ref, mask_ref, o_ref, m_sc, l_sc, acc_sc = refs
    else:
        q_ref, k_ref, v_ref, o_ref, m_sc, l_sc, acc_sc = refs
        mask_ref = None

    kv = pl.program_id(2)

    @pl.when(kv == 0)
    def _init():
        m_sc[...] = jnp.full_like(m_sc, _NEG_INF)
        l_sc[...] = jnp.zeros_like(l_sc)
        acc_sc[...] = jnp.zeros_like(acc_sc)

    # Scale q (tq*D multiplies) instead of the logits (tq*tk multiplies).
    q = q_ref[0] * jnp.asarray(scaling, dtype=q_ref.dtype)       # (tq, D)
    k = k_ref[0]                                                 # (tk, D)

    # s = q @ k^T on the MXU (bf16 inputs, f32 accumulation), no transpose.
    s = lax.dot_general(q, k, (((1,), (1,)), ((), ())),
                        preferred_element_type=jnp.float32)      # (tq, tk)

    if mask_ref is not None:
        s = jnp.where(mask_ref[0] != 0, _NEG_INF, s)
    if mask_kv_tail:
        # Hide the padded key columns of the last tile (no user mask present).
        col = kv * tile_k + lax.broadcasted_iota(jnp.int32, s.shape, 1)
        s = jnp.where(col < k_len, s, _NEG_INF)

    m_prev = m_sc[...]                                           # (tq, 1)
    m_new = jnp.maximum(m_prev, s.max(axis=-1, keepdims=True))
    alpha = jnp.exp(m_prev - m_new)                              # EUP
    p = jnp.exp(s - m_new)                                       # EUP

    l_sc[...] = alpha * l_sc[...] + p.sum(axis=-1, keepdims=True)
    acc_sc[...] = alpha * acc_sc[...] + jnp.dot(
        p.astype(v_ref.dtype), v_ref[0], preferred_element_type=jnp.float32)
    m_sc[...] = m_new

    @pl.when(kv == pl.num_programs(2) - 1)
    def _finalize():
        inv_l = pl.reciprocal(l_sc[...], approx=False)           # EUP slot
        o_ref[0] = (acc_sc[...] * inv_l).astype(o_ref.dtype)


def scaled_dot_product_attention(q, k, v, mask=None, *, size=None,
                                 tile_q=256, tile_k=256,
                                 compute_dtype=jnp.bfloat16,
                                 kv_buffers=None):
    """q: (B, Lq, D); k: (B, Lk, D); v: (B, Lk, Dv); mask: optional (B, Lq, Lk) bool.

    Dropout is treated as identity (inference mode).
    kv_buffers=3 deepens the k/v/mask pipeline (useful on v5e).
    """
    B, Lq, D = q.shape
    _, Lk, _ = k.shape
    Dv = v.shape[-1]
    out_dtype = q.dtype
    if size is None:
        size = D
    scaling = 1.0 / math.sqrt(size)

    # Tile sizes: sublane-friendly (mult. of 32 works for f32/bf16/int8) on the
    # query axis, lane-friendly (mult. of 128) on the key axis. Clamp to the
    # (rounded-up) sequence lengths so small inputs don't over-allocate.
    tq = min(tile_q, _round_up(Lq, 32))
    tk = min(tile_k, _round_up(Lk, 128))
    Lq_pad = _round_up(Lq, tq)
    Lk_pad = _round_up(Lk, tk)
    grid = (B, Lq_pad // tq, Lk_pad // tk)

    # Feed the MXU narrow inputs; f32 accumulation happens in-kernel.
    qc = q.astype(compute_dtype)
    kc = k.astype(compute_dtype)
    vc = v.astype(compute_dtype)

    has_mask = mask is not None
    if has_mask:
        mask_i8 = jnp.broadcast_to(jnp.asarray(mask, jnp.bool_),
                                   (B, Lq, Lk)).astype(jnp.int8)

    if Lq_pad != Lq or Lk_pad != Lk:
        qc = jnp.pad(qc, ((0, 0), (0, Lq_pad - Lq), (0, 0)))
        kc = jnp.pad(kc, ((0, 0), (0, Lk_pad - Lk), (0, 0)))
        vc = jnp.pad(vc, ((0, 0), (0, Lk_pad - Lk), (0, 0)))
        if has_mask:
            mask_i8 = jnp.pad(mask_i8,
                              ((0, 0), (0, Lq_pad - Lq), (0, Lk_pad - Lk)),
                              constant_values=1)  # padded keys stay masked

    # In-kernel tail mask only needed when there is no user mask hiding the
    # padded key columns.
    mask_kv_tail = (Lk_pad != Lk) and not has_mask

    def kv_spec(shape, index_map):
        if kv_buffers is None:
            return pl.BlockSpec(shape, index_map)
        return pl.BlockSpec(shape, index_map,
                            pipeline_mode=pl.Buffered(kv_buffers))

    in_specs = [
        pl.BlockSpec((1, tq, D), lambda b, qi, ki: (b, qi, 0)),
        kv_spec((1, tk, D), lambda b, qi, ki: (b, ki, 0)),
        kv_spec((1, tk, Dv), lambda b, qi, ki: (b, ki, 0)),
    ]
    inputs = [qc, kc, vc]
    if has_mask:
        in_specs.append(kv_spec((1, tq, tk), lambda b, qi, ki: (b, qi, ki)))
        inputs.append(mask_i8)

    kernel = functools.partial(
        _sdpa_kernel, scaling=scaling, has_mask=has_mask,
        mask_kv_tail=mask_kv_tail, k_len=Lk, tile_k=tk)

    c_item = jnp.dtype(compute_dtype).itemsize
    o_item = jnp.dtype(out_dtype).itemsize
    bytes_accessed = ((B * Lq * D + B * Lk * D + B * Lk * Dv) * c_item
                      + B * Lq * Dv * o_item)
    if has_mask:
        bytes_accessed += B * Lq * Lk  # int8 mask stream
    cost = pl.CostEstimate(
        flops=2 * B * Lq * Lk * (D + Dv),
        transcendentals=B * Lq * Lk,
        bytes_accessed=bytes_accessed,
    )

    # Per-step VMEM budget (double/triple-buffered streams + scratch + f32
    # logits intermediate). Only raise the scoped limit when big user tiles
    # actually need it; keep under ~48 MiB for v7x's 64 MiB physical VMEM.
    nbuf = 2 if kv_buffers is None else kv_buffers
    vmem_bytes = (2 * tq * D * c_item
                  + nbuf * (tk * D + tk * Dv) * c_item
                  + 2 * tq * Dv * o_item
                  + (2 * tq + tq * Dv) * 4
                  + tq * tk * 4)
    if has_mask:
        vmem_bytes += nbuf * tq * tk
    vmem_limit = None
    if vmem_bytes > 24 * 1024 * 1024:
        vmem_limit = min(int(vmem_bytes * 3 // 2), 48 * 1024 * 1024)

    # TODO(synk): training-mode dropout (p=0.1) on the attention probabilities
    # would use pltpu.prng_seed + pltpu.prng_random_bits in-kernel; forward is
    # implemented in eval mode (dropout = identity).
    out_padded = pl.pallas_call(
        kernel,
        out_shape=jax.ShapeDtypeStruct((B, Lq_pad, Dv), out_dtype),
        grid_spec=pltpu.PrefetchScalarGridSpec(
            num_scalar_prefetch=0,
            grid=grid,
            in_specs=in_specs,
            out_specs=pl.BlockSpec((1, tq, Dv), lambda b, qi, ki: (b, qi, 0)),
            scratch_shapes=[
                pltpu.VMEM((tq, 1), jnp.float32),   # running max m
                pltpu.VMEM((tq, 1), jnp.float32),   # running denom l
                pltpu.VMEM((tq, Dv), jnp.float32),  # output accumulator
            ]),
        compiler_params=pltpu.CompilerParams(
            dimension_semantics=("parallel", "parallel", "arbitrary"),
            vmem_limit_bytes=vmem_limit),
        cost_estimate=cost,
    )(*inputs)

    if Lq_pad != Lq:
        out_padded = out_padded[:, :Lq, :]
    return out_padded


def _reference(q, k, v, scaling, mask=None, compute_dtype=jnp.bfloat16):
    """Pure-JAX reference mirroring the kernel's bf16-input / f32-accum path."""
    qc = q.astype(compute_dtype) * jnp.asarray(scaling, compute_dtype)
    kc = k.astype(compute_dtype)
    vc = v.astype(compute_dtype)
    s = jnp.einsum("bqd,bkd->bqk", qc, kc,
                   preferred_element_type=jnp.float32)
    if mask is not None:
        s = jnp.where(mask, _NEG_INF, s)
    p = jax.nn.softmax(s, axis=-1)
    out = jnp.einsum("bqk,bkd->bqd", p.astype(compute_dtype), vc,
                     preferred_element_type=jnp.float32)
    return out.astype(q.dtype)


if __name__ == "__main__":
    # Small deterministic example: batch=2, Lq=128, Lk=256, hidden=64.
    B, Lq, Lk, D, Dv = 2, 128, 256, 64, 64
    size = D
    scaling = 1.0 / math.sqrt(size)

    key = jax.random.PRNGKey(0)
    kq, kk, kv_, km = jax.random.split(key, 4)
    q = jax.random.normal(kq, (B, Lq, D), dtype=jnp.float32)
    k = jax.random.normal(kk, (B, Lk, D), dtype=jnp.float32)
    v = jax.random.normal(kv_, (B, Lk, Dv), dtype=jnp.float32)

    # Unmasked path.
    out = jax.block_until_ready(scaled_dot_product_attention(q, k, v, size=size))
    ref = jax.block_until_ready(_reference(q, k, v, scaling))
    assert out.shape == (B, Lq, Dv), out.shape
    err = float(jnp.max(jnp.abs(out - ref)))
    assert err < 2e-2, err

    # Masked path (ensure no row is fully masked to avoid the NaN corner case).
    mask = jax.random.bernoulli(km, 0.25, (B, Lq, Lk))
    mask = mask.at[:, :, 0].set(False)
    out_m = jax.block_until_ready(
        scaled_dot_product_attention(q, k, v, mask=mask, size=size))
    ref_m = jax.block_until_ready(_reference(q, k, v, scaling, mask=mask))
    err_m = float(jnp.max(jnp.abs(out_m - ref_m)))
    assert err_m < 2e-2, err_m

    # Ragged lengths: exercises padded q rows and the masked key tail tile.
    Lq2, Lk2 = 100, 200
    q2 = jax.random.normal(kq, (B, Lq2, D), dtype=jnp.float32)
    k2 = jax.random.normal(kk, (B, Lk2, D), dtype=jnp.float32)
    v2 = jax.random.normal(kv_, (B, Lk2, Dv), dtype=jnp.float32)
    out_r = jax.block_until_ready(
        scaled_dot_product_attention(q2, k2, v2, size=size))
    ref_r = jax.block_until_ready(_reference(q2, k2, v2, scaling))
    assert out_r.shape == (B, Lq2, Dv), out_r.shape
    err_r = float(jnp.max(jnp.abs(out_r - ref_r)))
    assert err_r < 2e-2, err_r

    print("KERNEL_OK")
</pallas_src>

<mosaic_0001>
module attributes {stable_mosaic.version = 11 : i64} {
  func.func @_sdpa_kernel(%arg0: i32, %arg1: i32, %arg2: i32, %arg3: memref<1x128x64xbf16, #tpu.memory_space<vmem>>, %arg4: memref<1x256x64xbf16, #tpu.memory_space<vmem>>, %arg5: memref<1x256x64xbf16, #tpu.memory_space<vmem>>, %arg6: memref<1x128x64xf32, #tpu.memory_space<vmem>>, %arg7: memref<128x1xf32, #tpu.memory_space<vmem>>, %arg8: memref<128x1xf32, #tpu.memory_space<vmem>>, %arg9: memref<128x64xf32, #tpu.memory_space<vmem>>) attributes {dimension_semantics = [#tpu.dimension_semantics<parallel>, #tpu.dimension_semantics<parallel>, #tpu.dimension_semantics<arbitrary>], iteration_bounds = array<i64: 2, 1, 1>, scalar_prefetch = 0 : i64, scratch_operands = 3 : i64, tpu.core_type = #tpu.core_type<tc>, window_params = [{transform_indices = @transform_0, window_bounds = array<i64: 1, 128, 64>}, {transform_indices = @transform_1, window_bounds = array<i64: 1, 256, 64>}, {transform_indices = @transform_2, window_bounds = array<i64: 1, 256, 64>}, {transform_indices = @transform_3, window_bounds = array<i64: 1, 128, 64>}]} {
    %c0_i32 = arith.constant 0 : i32
    %0 = arith.cmpi eq, %arg2, %c0_i32 : i32
    %1 = arith.extui %0 : i1 to i32
    %c0_i32_0 = arith.constant 0 : i32
    %2 = arith.cmpi ne, %1, %c0_i32_0 : i32
    scf.if %2 {
      %cst_27 = arith.constant -1.000000e+30 : f32
      %38 = vector.broadcast %cst_27 : f32 to vector<128x1xf32>
      %c0_28 = arith.constant 0 : index
      %c0_29 = arith.constant 0 : index
      %39 = vector.load %arg7[%c0_28, %c0_29] : memref<128x1xf32, #tpu.memory_space<vmem>>, vector<128x1xf32>
      tpu.vector_store %arg7[%c0_28, %c0_29], %38 {strides = array<i32>} : memref<128x1xf32, #tpu.memory_space<vmem>>, vector<128x1xf32>,
      %cst_30 = arith.constant 0.000000e+00 : f32
      %40 = vector.broadcast %cst_30 : f32 to vector<128x1xf32>
      %c0_31 = arith.constant 0 : index
      %c0_32 = arith.constant 0 : index
      %41 = vector.load %arg8[%c0_31, %c0_32] : memref<128x1xf32, #tpu.memory_space<vmem>>, vector<128x1xf32>
      tpu.vector_store %arg8[%c0_31, %c0_32], %40 {strides = array<i32>} : memref<128x1xf32, #tpu.memory_space<vmem>>, vector<128x1xf32>,
      %cst_33 = arith.constant 0.000000e+00 : f32
      %42 = vector.broadcast %cst_33 : f32 to vector<128x64xf32>
      %c0_34 = arith.constant 0 : index
      %c0_35 = arith.constant 0 : index
      %43 = vector.load %arg9[%c0_34, %c0_35] : memref<128x64xf32, #tpu.memory_space<vmem>>, vector<128x64xf32>
      tpu.vector_store %arg9[%c0_34, %c0_35], %42 {strides = array<i32>} : memref<128x64xf32, #tpu.memory_space<vmem>>, vector<128x64xf32>,
    } else {
    }
    %c0 = arith.constant 0 : index
    %c0_1 = arith.constant 0 : index
    %c0_2 = arith.constant 0 : index
    %3 = vector.load %arg3[%c0, %c0_1, %c0_2] : memref<1x128x64xbf16, #tpu.memory_space<vmem>>, vector<1x128x64xbf16>
    %4 = vector.shape_cast %3 : vector<1x128x64xbf16> to vector<128x64xbf16>
    %cst = arith.constant 1.250000e-01 : bf16
    %5 = vector.broadcast %cst : bf16 to vector<128x64xbf16>
    %6 = arith.mulf %4, %5 : vector<128x64xbf16>
    %c0_3 = arith.constant 0 : index
    %c0_4 = arith.constant 0 : index
    %c0_5 = arith.constant 0 : index
    %7 = vector.load %arg4[%c0_3, %c0_4, %c0_5] : memref<1x256x64xbf16, #tpu.memory_space<vmem>>, vector<1x256x64xbf16>
    %8 = vector.shape_cast %7 : vector<1x256x64xbf16> to vector<256x64xbf16>
    %cst_6 = arith.constant dense<0.000000e+00> : vector<128x256xf32>
    %9 = tpu.matmul %6, %8, %cst_6 {dimension_numbers = #tpu.dot_dimension_numbers<[1], [1], [0], [0], [0, 0, 1, 0], [], []>} : vector<128x64xbf16>, vector<256x64xbf16>, vector<128x256xf32> -> vector<128x256xf32>
    %c0_7 = arith.constant 0 : index
    %c0_8 = arith.constant 0 : index
    %10 = vector.load %arg7[%c0_7, %c0_8] : memref<128x1xf32, #tpu.memory_space<vmem>>, vector<128x1xf32>
    %cst_9 = arith.constant dense<0xFF800000> : vector<128xf32>
    %11 = vector.multi_reduction <maximumf>, %9, %cst_9 [1] : vector<128x256xf32> to vector<128xf32>
    %12 = vector.shape_cast %11 : vector<128xf32> to vector<128x1xf32>
    %13 = arith.maximumf %10, %12 : vector<128x1xf32>
    %14 = arith.subf %10, %13 : vector<128x1xf32>
    %15 = math.exp %14 : vector<128x1xf32>
    %16 = vector.broadcast %13 : vector<128x1xf32> to vector<128x256xf32>
    %17 = arith.subf %9, %16 : vector<128x256xf32>
    %18 = math.exp %17 : vector<128x256xf32>
    %c0_10 = arith.constant 0 : index
    %c0_11 = arith.constant 0 : index
    %19 = vector.load %arg8[%c0_10, %c0_11] : memref<128x1xf32, #tpu.memory_space<vmem>>, vector<128x1xf32>
    %20 = arith.mulf %15, %19 : vector<128x1xf32>
    %cst_12 = arith.constant dense<0.000000e+00> : vector<128xf32>
    %21 = vector.multi_reduction <add>, %18, %cst_12 [1] : vector<128x256xf32> to vector<128xf32>
    %22 = vector.shape_cast %21 : vector<128xf32> to vector<128x1xf32>
    %23 = arith.addf %20, %22 : vector<128x1xf32>
    %c0_13 = arith.constant 0 : index
    %c0_14 = arith.constant 0 : index
    %24 = vector.load %arg8[%c0_13, %c0_14] : memref<128x1xf32, #tpu.memory_space<vmem>>, vector<128x1xf32>
    tpu.vector_store %arg8[%c0_13, %c0_14], %23 {strides = array<i32>} : memref<128x1xf32, #tpu.memory_space<vmem>>, vector<128x1xf32>,
    %c0_15 = arith.constant 0 : index
    %c0_16 = arith.constant 0 : index
    %25 = vector.load %arg9[%c0_15, %c0_16] : memref<128x64xf32, #tpu.memory_space<vmem>>, vector<128x64xf32>
    %26 = vector.broadcast %15 : vector<128x1xf32> to vector<128x64xf32>
    %27 = arith.mulf %26, %25 : vector<128x64xf32>
    %28 = arith.truncf %18 : vector<128x256xf32> to vector<128x256xbf16>
    %c0_17 = arith.constant 0 : index
    %c0_18 = arith.constant 0 : index
    %c0_19 = arith.constant 0 : index
    %29 = vector.load %arg5[%c0_17, %c0_18, %c0_19] : memref<1x256x64xbf16, #tpu.memory_space<vmem>>, vector<1x256x64xbf16>
    %30 = vector.shape_cast %29 : vector<1x256x64xbf16> to vector<256x64xbf16>
    %cst_20 = arith.constant dense<0.000000e+00> : vector<128x64xf32>
    %31 = tpu.matmul %28, %30, %cst_20 {dimension_numbers = #tpu.dot_dimension_numbers<[1], [0], [0], [1], [0, 0, 1, 1], [], []>} : vector<128x256xbf16>, vector<256x64xbf16>, vector<128x64xf32> -> vector<128x64xf32>
    %32 = arith.addf %27, %31 : vector<128x64xf32>
    %c0_21 = arith.constant 0 : index
    %c0_22 = arith.constant 0 : index
    %33 = vector.load %arg9[%c0_21, %c0_22] : memref<128x64xf32, #tpu.memory_space<vmem>>, vector<128x64xf32>
    tpu.vector_store %arg9[%c0_21, %c0_22], %32 {strides = array<i32>} : memref<128x64xf32, #tpu.memory_space<vmem>>, vector<128x64xf32>,
    %c0_23 = arith.constant 0 : index
    %c0_24 = arith.constant 0 : index
    %34 = vector.load %arg7[%c0_23, %c0_24] : memref<128x1xf32, #tpu.memory_space<vmem>>, vector<128x1xf32>
    tpu.vector_store %arg7[%c0_23, %c0_24], %13 {strides = array<i32>} : memref<128x1xf32, #tpu.memory_space<vmem>>, vector<128x1xf32>,
    %c0_i32_25 = arith.constant 0 : i32
    %35 = arith.cmpi eq, %arg2, %c0_i32_25 : i32
    %36 = arith.extui %35 : i1 to i32
    %c0_i32_26 = arith.constant 0 : i32
    %37 = arith.cmpi ne, %36, %c0_i32_26 : i32
    scf.if %37 {
      %c0_27 = arith.constant 0 : index
      %c0_28 = arith.constant 0 : index
      %38 = vector.load %arg8[%c0_27, %c0_28] : memref<128x1xf32, #tpu.memory_space<vmem>>, vector<128x1xf32>
      %39 = tpu.reciprocal %38 : vector<128x1xf32> -> vector<128x1xf32>
      %c0_29 = arith.constant 0 : index
      %c0_30 = arith.constant 0 : index
      %40 = vector.load %arg9[%c0_29, %c0_30] : memref<128x64xf32, #tpu.memory_space<vmem>>, vector<128x64xf32>
      %41 = vector.broadcast %39 : vector<128x1xf32> to vector<128x64xf32>
      %42 = arith.mulf %40, %41 : vector<128x64xf32>
      %c0_31 = arith.constant 0 : index
      %c0_32 = arith.constant 0 : index
      %c0_33 = arith.constant 0 : index
      %43 = vector.load %arg6[%c0_31, %c0_32, %c0_33] : memref<1x128x64xf32, #tpu.memory_space<vmem>>, vector<1x128x64xf32>
      %44 = vector.shape_cast %43 : vector<1x128x64xf32> to vector<128x64xf32>
      %45 = vector.shape_cast %42 : vector<128x64xf32> to vector<1x128x64xf32>
      tpu.vector_store %arg6[%c0_31, %c0_32, %c0_33], %45 {strides = array<i32>} : memref<1x128x64xf32, #tpu.memory_space<vmem>>, vector<1x128x64xf32>,
    } else {
    }
    return
  }
  func.func @transform_0(%arg0: i32, %arg1: i32, %arg2: i32) -> (i32, i32, i32) {
    %c0_i32 = arith.constant 0 : i32
    %c0_i32_0 = arith.constant 0 : i32
    return %arg0, %arg1, %c0_i32 : i32, i32, i32
  }
  func.func @transform_1(%arg0: i32, %arg1: i32, %arg2: i32) -> (i32, i32, i32) {
    %c0_i32 = arith.constant 0 : i32
    %c0_i32_0 = arith.constant 0 : i32
    return %arg0, %arg2, %c0_i32 : i32, i32, i32
  }
  func.func @transform_2(%arg0: i32, %arg1: i32, %arg2: i32) -> (i32, i32, i32) {
    %c0_i32 = arith.constant 0 : i32
    %c0_i32_0 = arith.constant 0 : i32
    return %arg0, %arg2, %c0_i32 : i32, i32, i32
  }
  func.func @transform_3(%arg0: i32, %arg1: i32, %arg2: i32) -> (i32, i32, i32) {
    %c0_i32 = arith.constant 0 : i32
    %c0_i32_0 = arith.constant 0 : i32
    return %arg0, %arg1, %c0_i32 : i32, i32, i32
  }
}

</mosaic_0001>

<bundles_post_ra>
// kernel: tpu_custom_call.1
= control target key start
LH: loop header
LB: loop body
LE: loop exit
PB: predicated region body
PF: predicated region fallthrough
CT: control target
= control target key end

     0   :  { %s2229_s12 = smov 0   ;;  %s2231_s13 = smov 0   ;;  %s2849_s0 = inlined_call_operand.vmem [shape: bf16[2,128,64], index: 0, kind: input, shape index: {}]   ;;  %s2850_s1 = inlined_call_operand.vmem [shape: bf16[2,256,64], index: 1, kind: input, shape index: {}]   ;;  %s2851_s2 = inlined_call_operand.vmem [shape: bf16[2,256,64], index: 2, kind: input, shape index: {}]   ;;  %s2852_s3 = inlined_call_operand.vmem [shape: f32[2,128,64], index: 3, kind: output, shape index: {}]  }
   0x1   :  { %s2233_s14 = smov 0  }
   0x2 LB: > { %s32_s15 = sadd.s32 1, %s2200_s13  ;;  %p1826_p0 = scmp.ge.s32.totalorder %s2204_s14, 1  ;;  %s2204_s14 = sphi %s2233_s14, %s13_s14   ;;  %s2200_s13 = sphi %s2231_s13, %s2909_s13   ;;  %s2196_s12 = sphi %s2229_s12, %s2908_s12  }
   0x3   : > { %p34_p1 = scmp.ge.s32.totalorder %s32_s15, 2  ;;  %p199_p2 = scmp.lt.s32.totalorder %s2204_s14, 3 }
   0x5   : > { %s2911_s15 = smov (%p34_p1, %s32_s15), 0  ;;  %p200_p3 = pnand %p1826_p0, %p199_p2 }
   0x7   : > { %203 = sbr.rel (%p200_p3) target bundleno = 942 (0x3ae), region = 32 }
   0xe   : > { %p250_p4 = scmp.lt.s32.totalorder %s2196_s12, 1  ;;  %vm328_vm0 = vcmask 523264   ;;  %vm295_vm1 = vcmask 7168  }
  0x10   : > { %s2913_s12 = smov (!%p250_p4, %s2196_s12), 1 }
  0x11   : > { %s2247_s16 = sshll.u32 %s2913_s12, 7  ;;  %s1885_s20 = sshll.u32 %s2913_s12, 6 }
  0x12   : > { %s2253_s19 = scalar_lea.vmem %s2850_s1, %s2247_s16  ;;  %s2269_s23 = scalar_lea.vmem %s2849_s0, %s1885_s20 }
  0x13   : > { %v2022_v0 = vld [vmem:[%s2253_s19 + $0x40] sm:$0xff]   ;;  %v2024_v2 = vld [vmem:[%s2253_s19 + $0x48] sm:$0xff]   ;;  %v2026_v6 = vld [vmem:[%s2253_s19 + $0x50] sm:$0xff]   ;;  %s2472_s26 = scalar_lea.vmem %s2851_s2, %s2247_s16  ;;  %s2806_s29 = scalar_lea.vmem %s2852_s3, %s2247_s16 }
  0x14   : > { %v2023_v1 = vld [vmem:[%s2253_s19] sm:$0xff]   ;;  %1985 = vmatprep.subr.msk.bf16.mxu0 %vm328_vm0, %v2022_v0  ;;  %v2025_v4 = vld [vmem:[%s2253_s19 + $0x8] sm:$0xff]   ;;  %v2027_v7 = vld [vmem:[%s2253_s19 + $0x10] sm:$0xff]   ;;  %v2206_v0 = vmov -1e+30  }
  0x15   : > { %v555_v3 = vsel %vm328_vm0, %v2023_v1, 0  ;;  %v558_v5 = vsel %vm328_vm0, %v2025_v4, 0  ;;  %v345_v8 = vld [vmem:[%s2269_s23] sm:$0xf]  ;;  %v346_v9 = vld [vmem:[%s2269_s23 + $0x4] sm:$0xf] }
  0x16   : > { %1890 = vmatpush3.bf16.xpose.msra.mxu0 %v555_v3  ;;  %v561_v10 = vsel %vm328_vm0, %v2027_v7, 0  ;;  %v2028_v11 = vld [vmem:[%s2253_s19 + $0x58] sm:$0xff]   ;;  %v361_v12 = vmul.bf16 1040203264, %v345_v8  ;;  %v362_v13 = vmul.bf16 1040203264, %v346_v9 }
  0x17   : > { %1986 = vmatprep.subr.msk.bf16.mxu0 %vm328_vm0, %v2024_v2  ;;  %v2029_v15 = vld [vmem:[%s2253_s19 + $0x18] sm:$0xff]   ;;  %v2030_v17 = vld [vmem:[%s2253_s19 + $0x60] sm:$0xff]   ;;  %v2032_v20 = vld [vmem:[%s2253_s19 + $0x68] sm:$0xff]   ;;  %296 = vst.msk [vmem:[#allocation2] sm:$0xff] %vm295_vm1, %v2206_v0 }
  0x18   : > { %v1835_v14 = vcombine.low %v361_v12, %v362_v13  ;;  %v564_v16 = vsel %vm328_vm0, %v2029_v15, 0  ;;  %v2031_v18 = vld [vmem:[%s2253_s19 + $0x20] sm:$0xff]   ;;  %v2033_v21 = vld [vmem:[%s2253_s19 + $0x28] sm:$0xff]   ;;  %v2034_v23 = vld [vmem:[%s2253_s19 + $0x70] sm:$0xff]   ;;  %297 = vst.msk [vmem:[#allocation2 + $0x8] sm:$0xff] %vm295_vm1, %v2206_v0 }
  0x19   : > { %v567_v19 = vsel %vm328_vm0, %v2031_v18, 0  ;;  %v570_v22 = vsel %vm328_vm0, %v2033_v21, 0  ;;  %v2035_v24 = vld [vmem:[%s2253_s19 + $0x30] sm:$0xff]   ;;  %v2036_v26 = vld [vmem:[%s2253_s19 + $0x78] sm:$0xff]   ;;  %v347_v29 = vld [vmem:[%s2269_s23 + $0x8] sm:$0xf] }
  0x1a   : > { %1905 = vmatprep.mubr.msk.bf16.mxu0 %vm328_vm0, %v1835_v14  ;;  %v573_v25 = vsel %vm328_vm0, %v2035_v24, 0  ;;  %v2037_v27 = vld [vmem:[%s2253_s19 + $0x38] sm:$0xff]   ;;  %v348_v30 = vld [vmem:[%s2269_s23 + $0xc] sm:$0xf]  ;;  %v363_v31 = vmul.bf16 1040203264, %v347_v29 }
  0x1b   : > { %v576_v28 = vsel %vm328_vm0, %v2037_v27, 0  ;;  %v364_v32 = vmul.bf16 1040203264, %v348_v30  ;;  %v349_v34 = vld [vmem:[%s2269_s23 + $0x10] sm:$0xf]  ;;  %298 = vst.msk [vmem:[#allocation2 + $0x10] sm:$0xff] %vm295_vm1, %v2206_v0 }
  0x1c   : > { %v350_v35 = vld [vmem:[%s2269_s23 + $0x14] sm:$0xf]  ;;  %v365_v36 = vmul.bf16 1040203264, %v349_v34  ;;  %v351_v39 = vld [vmem:[%s2269_s23 + $0x18] sm:$0xf] }
  0x1d   : > { %v1836_v33 = vcombine.low %v363_v31, %v364_v32  ;;  %v366_v37 = vmul.bf16 1040203264, %v350_v35  ;;  %v352_v40 = vld [vmem:[%s2269_s23 + $0x1c] sm:$0xf]  ;;  %v367_v41 = vmul.bf16 1040203264, %v351_v39 }
  0x1e   : > { %1892 = vmatpush3.bf16.xpose.msra.mxu0 %v558_v5  ;;  %v368_v42 = vmul.bf16 1040203264, %v352_v40  ;;  %v353_v44 = vld [vmem:[%s2269_s23 + $0x20] sm:$0xf]  ;;  %v354_v45 = vld [vmem:[%s2269_s23 + $0x24] sm:$0xf] }
  0x1f   : > { %1987 = vmatprep.subr.msk.bf16.mxu0 %vm328_vm0, %v2026_v6  ;;  %v1837_v38 = vcombine.low %v365_v36, %v366_v37  ;;  %v369_v46 = vmul.bf16 1040203264, %v353_v44  ;;  %v370_v47 = vmul.bf16 1040203264, %v354_v45  ;;  %v355_v49 = vld [vmem:[%s2269_s23 + $0x28] sm:$0xf] }
  0x20   : > { %v1838_v43 = vcombine.low %v367_v41, %v368_v42  ;;  %v356_v50 = vld [vmem:[%s2269_s23 + $0x2c] sm:$0xf]  ;;  %v371_v51 = vmul.bf16 1040203264, %v355_v49  ;;  %v357_v54 = vld [vmem:[%s2269_s23 + $0x30] sm:$0xf] }
  0x21   : > { %v1839_v48 = vcombine.low %v369_v46, %v370_v47  ;;  %v372_v52 = vmul.bf16 1040203264, %v356_v50  ;;  %v358_v55 = vld [vmem:[%s2269_s23 + $0x34] sm:$0xf]  ;;  %v373_v56 = vmul.bf16 1040203264, %v357_v54 }
  0x22   : > { %v374_v57 = vmul.bf16 1040203264, %v358_v55  ;;  %v359_v59 = vld [vmem:[%s2269_s23 + $0x38] sm:$0xf]  ;;  %v360_v60 = vld [vmem:[%s2269_s23 + $0x3c] sm:$0xf] }
  0x23   : > { %v1840_v53 = vcombine.low %v371_v51, %v372_v52  ;;  %v375_v61 = vmul.bf16 1040203264, %v359_v59  ;;  %v376_v62 = vmul.bf16 1040203264, %v360_v60  ;;  %299 = vst.msk [vmem:[#allocation2 + $0x18] sm:$0xff] %vm295_vm1, %v2206_v0  ;;  %300 = vst.msk [vmem:[#allocation2 + $0x20] sm:$0xff] %vm295_vm1, %v2206_v0 }
  0x24   : > { %v1841_v58 = vcombine.low %v373_v56, %v374_v57  ;;  %301 = vst.msk [vmem:[#allocation2 + $0x28] sm:$0xff] %vm295_vm1, %v2206_v0  ;;  %302 = vst.msk [vmem:[#allocation2 + $0x30] sm:$0xff] %vm295_vm1, %v2206_v0  ;;  %v2207_v18 = vmov 0   ;;  %v2038_v51 = vld [vmem:[%s2472_s26 + $0x40] sm:$0xff]   ;;  %v2041_v54 = vld [vmem:[%s2472_s26 + $0x8] sm:$0xff]  }
  0x25   : > { %v1842_v63 = vcombine.low %v375_v61, %v376_v62  ;;  %303 = vst.msk [vmem:[#allocation2 + $0x38] sm:$0xff] %vm295_vm1, %v2206_v0  ;;  %304 = vst.msk [vmem:[#allocation2 + $0x40] sm:$0xff] %vm295_vm1, %v2206_v0  ;;  %2020 = vset.pattern.permute.xlu0 %v2207_v18  ;;  %2021 = vset.pattern.permute.xlu1 %v2207_v18  ;;  %v2039_v52 = vld [vmem:[%s2472_s26] sm:$0xff]   ;;  %v2042_v55 = vld [vmem:[%s2472_s26 + $0x50] sm:$0xff]  }
  0x26   : > { %1894 = vmatpush3.bf16.xpose.msra.mxu0 %v561_v10  ;;  %305 = vst.msk [vmem:[#allocation2 + $0x48] sm:$0xff] %vm295_vm1, %v2206_v0  ;;  %306 = vst.msk [vmem:[#allocation2 + $0x50] sm:$0xff] %vm295_vm1, %v2206_v0  ;;  %1921 = vmatprep.subr.bf16.mxu1 %v2038_v51  ;;  %v2043_v56 = vld [vmem:[%s2472_s26 + $0x10] sm:$0xff]   ;;  %v2480_v57 = vld [vmem:[#allocation2] sm:$0xff] }
  0x27   : > { %1988 = vmatprep.subr.msk.bf16.mxu0 %vm328_vm0, %v2028_v11  ;;  %307 = vst.msk [vmem:[#allocation2 + $0x58] sm:$0xff] %vm295_vm1, %v2206_v0  ;;  %308 = vst.msk [vmem:[#allocation2 + $0x60] sm:$0xff] %vm295_vm1, %v2206_v0  ;;  %1922 = vmatpush3.bf16.msra.mxu1 %v2039_v52  ;;  %v2485_v60 = vld [vmem:[#allocation2 + $0x8] sm:$0xff]  ;;  %v2051_v52 = vld [vmem:[%s2472_s26 + $0x30] sm:$0xff]  }
  0x28   : > { %309 = vst.msk [vmem:[#allocation2 + $0x68] sm:$0xff] %vm295_vm1, %v2206_v0  ;;  %310 = vst.msk [vmem:[#allocation2 + $0x70] sm:$0xff] %vm295_vm1, %v2206_v0 }
  0x29   : > { %311 = vst.msk [vmem:[#allocation2 + $0x78] sm:$0xff] %vm295_vm1, %v2206_v0 }
  0x2e   : > { %1896 = vmatpush3.bf16.xpose.msra.mxu0 %v564_v16 }
  0x2f   : > { %1989 = vmatprep.subr.msk.bf16.mxu0 %vm328_vm0, %v2030_v17 }
  0x30   : > { %v2632_v61 = vld [vmem:[#allocation2 + $0x78] sm:$0xff] }
  0x31   : > { %2876 = vst [vmem:[#allocation15_spill] sm:$0xff] %v2632_v61 }
  0x36   : > { %1898 = vmatpush3.bf16.xpose.msra.mxu0 %v567_v19 }
  0x37   : > { %1990 = vmatprep.subr.msk.bf16.mxu0 %vm328_vm0, %v2032_v20 }
  0x3e   : > { %1900 = vmatpush3.bf16.xpose.msra.mxu0 %v570_v22 }
  0x3f   : > { %1991 = vmatprep.subr.msk.bf16.mxu0 %vm328_vm0, %v2034_v23 }
  0x46   : > { %1902 = vmatpush3.bf16.xpose.msra.mxu0 %v573_v25 }
  0x47   : > { %1992 = vmatprep.subr.msk.bf16.mxu0 %vm328_vm0, %v2036_v26  ;;  %v2208_v26 = vmov 0.0  }
  0x48   : > { %312 = vst.msk [vmem:[#allocation3] sm:$0xff] %vm295_vm1, %v2208_v26  ;;  %313 = vst.msk [vmem:[#allocation3 + $0x8] sm:$0xff] %vm295_vm1, %v2208_v26 }
  0x49   : > { %314 = vst.msk [vmem:[#allocation3 + $0x10] sm:$0xff] %vm295_vm1, %v2208_v26  ;;  %315 = vst.msk [vmem:[#allocation3 + $0x18] sm:$0xff] %vm295_vm1, %v2208_v26 }
  0x4a   : > { %316 = vst.msk [vmem:[#allocation3 + $0x20] sm:$0xff] %vm295_vm1, %v2208_v26  ;;  %317 = vst.msk [vmem:[#allocation3 + $0x28] sm:$0xff] %vm295_vm1, %v2208_v26 }
  0x4b   : > { %318 = vst.msk [vmem:[#allocation3 + $0x30] sm:$0xff] %vm295_vm1, %v2208_v26  ;;  %319 = vst.msk [vmem:[#allocation3 + $0x38] sm:$0xff] %vm295_vm1, %v2208_v26 }
  0x4c   : > { %320 = vst.msk [vmem:[#allocation3 + $0x40] sm:$0xff] %vm295_vm1, %v2208_v26  ;;  %321 = vst.msk [vmem:[#allocation3 + $0x48] sm:$0xff] %vm295_vm1, %v2208_v26 }
  0x4d   : > { %322 = vst.msk [vmem:[#allocation3 + $0x50] sm:$0xff] %vm295_vm1, %v2208_v26  ;;  %323 = vst.msk [vmem:[#allocation3 + $0x58] sm:$0xff] %vm295_vm1, %v2208_v26 }
  0x4e   : > { %1904 = vmatpush3.bf16.xpose.msra.mxu0 %v576_v28  ;;  %324 = vst.msk [vmem:[#allocation3 + $0x60] sm:$0xff] %vm295_vm1, %v2208_v26  ;;  %325 = vst.msk [vmem:[#allocation3 + $0x68] sm:$0xff] %vm295_vm1, %v2208_v26 }
  0x4f   : > { %326 = vst.msk [vmem:[#allocation3 + $0x70] sm:$0xff] %vm295_vm1, %v2208_v26  ;;  %327 = vst.msk [vmem:[#allocation3 + $0x78] sm:$0xff] %vm295_vm1, %v2208_v26 }
  0x50   : > { %329 = vst.msk [vmem:[#allocation4] sm:$0xff] %vm328_vm0, %v2208_v26  ;;  %330 = vst.msk [vmem:[#allocation4 + $0x8] sm:$0xff] %vm328_vm0, %v2208_v26 }
  0x51   : > { %331 = vst.msk [vmem:[#allocation4 + $0x10] sm:$0xff] %vm328_vm0, %v2208_v26  ;;  %332 = vst.msk [vmem:[#allocation4 + $0x18] sm:$0xff] %vm328_vm0, %v2208_v26 }
  0x52   : > { %333 = vst.msk [vmem:[#allocation4 + $0x20] sm:$0xff] %vm328_vm0, %v2208_v26  ;;  %334 = vst.msk [vmem:[#allocation4 + $0x28] sm:$0xff] %vm328_vm0, %v2208_v26 }
  0x53   : > { %335 = vst.msk [vmem:[#allocation4 + $0x30] sm:$0xff] %vm328_vm0, %v2208_v26  ;;  %336 = vst.msk [vmem:[#allocation4 + $0x38] sm:$0xff] %vm328_vm0, %v2208_v26 }
  0x54   : > { %337 = vst.msk [vmem:[#allocation4 + $0x40] sm:$0xff] %vm328_vm0, %v2208_v26  ;;  %338 = vst.msk [vmem:[#allocation4 + $0x48] sm:$0xff] %vm328_vm0, %v2208_v26 }
  0x55   : > { %1906 = vmatmul.mubr.msk.bf16.vlgmr.msra.gmra.mrb[0].mxu0 %vm328_vm0, %v1835_v14  ;;  %339 = vst.msk [vmem:[#allocation4 + $0x50] sm:$0xff] %vm328_vm0, %v2208_v26  ;;  %340 = vst.msk [vmem:[#allocation4 + $0x58] sm:$0xff] %vm328_vm0, %v2208_v26 }
  0x56   : > { %1907 = vmatprep.mubr.msk.bf16.mxu0 %vm328_vm0, %v1836_v33  ;;  %341 = vst.msk [vmem:[#allocation4 + $0x60] sm:$0xff] %vm328_vm0, %v2208_v26  ;;  %342 = vst.msk [vmem:[#allocation4 + $0x68] sm:$0xff] %vm328_vm0, %v2208_v26 }
  0x57   : > { %343 = vst.msk [vmem:[#allocation4 + $0x70] sm:$0xff] %vm328_vm0, %v2208_v26  ;;  %344 = vst.msk [vmem:[#allocation4 + $0x78] sm:$0xff] %vm328_vm0, %v2208_v26 }
  0x5d   : > { %1908 = vmatmul.mubr.msk.bf16.gmra.mrb[4].mxu0 %vm328_vm0, %v1836_v33 }
  0x5e   : > { %1909 = vmatprep.mubr.msk.bf16.mxu0 %vm328_vm0, %v1837_v38 }
  0x65   : > { %1910 = vmatmul.mubr.msk.bf16.gmra.mrb[8].mxu0 %vm328_vm0, %v1837_v38 }
  0x66   : > { %1911 = vmatprep.mubr.msk.bf16.mxu0 %vm328_vm0, %v1838_v43 }
  0x6d   : > { %1912 = vmatmul.mubr.msk.bf16.gmra.mrb[12].mxu0 %vm328_vm0, %v1838_v43 }
  0x6e   : > { %1913 = vmatprep.mubr.msk.bf16.mxu0 %vm328_vm0, %v1839_v48 }
  0x75   : > { %1914 = vmatmul.mubr.msk.bf16.gmra.mrb[16].mxu0 %vm328_vm0, %v1839_v48 }
  0x76   : > { %1915 = vmatprep.mubr.msk.bf16.mxu0 %vm328_vm0, %v1840_v53 }
  0x7d   : > { %1916 = vmatmul.mubr.msk.bf16.gmra.mrb[20].mxu0 %vm328_vm0, %v1840_v53  ;;  %v2040_v53 = vld [vmem:[%s2472_s26 + $0x48] sm:$0xff]  }
  0x7e   : > { %1917 = vmatprep.mubr.msk.bf16.mxu0 %vm328_vm0, %v1841_v58  ;;  %1923 = vmatprep.subr.bf16.mxu1 %v2040_v53 }
  0x7f   : > { %1924 = vmatpush3.bf16.msra.mxu1 %v2041_v54 }
  0x80   : > { %1925 = vmatprep.subr.bf16.mxu1 %v2042_v55 }
  0x83   : > { %1926 = vmatpush3.bf16.msra.mxu1 %v2043_v56  ;;  %v2052_v56 = vld [vmem:[%s2472_s26 + $0x78] sm:$0xff]  }
  0x85   : > { %1918 = vmatmul.mubr.msk.bf16.gmra.mrb[24].mxu0 %vm328_vm0, %v1841_v58 }
  0x86   : > { %1919 = vmatprep.mubr.msk.bf16.mxu0 %vm328_vm0, %v1842_v63 }
  0x8d   : > { %1920 = vmatmul.mubr.msk.bf16.gmra.mrb[28].mxu0 %vm328_vm0, %v1842_v63  ;;  %v2044_v63 = vld [vmem:[%s2472_s26 + $0x58] sm:$0xff]  }
  0x8e   : > { %1927 = vmatprep.subr.bf16.mxu1 %v2044_v63  ;;  %v2549_v63 = vld [vmem:[#allocation2 + $0x30] sm:$0xff] }
 0x128   : > { %v2340_v1 = vpop.f32.mrb[0].mxu0 }
 0x129   : > { %v2342_v2 = vpop.f32.mrb[1].mxu0 }
 0x12a   : > { %v2344_v3 = vpop.f32.mrb[2].mxu0  ;;  %v731_v4 = vmax.f32 %v2340_v1, %v2342_v2 }
 0x12b   : > { %v2348_v5 = vpop.f32.mrb[3].mxu0 }
 0x12c   : > { %732 = vmax.xlane.f32.xlu0 %v731_v4  ;;  %v734_v6 = vmax.f32 %v2344_v3, %v2348_v5  ;;  %v2045_v4 = vld [vmem:[%s2472_s26 + $0x18] sm:$0xff]  }
 0x12d   : > { %1928 = vmatpush3.bf16.msra.mxu1 %v2045_v4 }
 0x130   : > { %735 = vmax.xlane.f32.xlu0 %v734_v6  ;;  %v2352_v7 = vpop.f32.mrb[4].mxu0  ;;  %v2497_v6 = vld [vmem:[#allocation2 + $0x10] sm:$0xff] }
 0x131   : > { %v2354_v8 = vpop.f32.mrb[5].mxu0 }
 0x132   : > { %v2356_v9 = vpop.f32.mrb[6].mxu0  ;;  %v737_v10 = vmax.f32 %v2352_v7, %v2354_v8 }
 0x133   : > { %v2360_v11 = vpop.f32.mrb[7].mxu0 }
 0x134   : > { %738 = vmax.xlane.f32.xlu1 %v737_v10  ;;  %v740_v12 = vmax.f32 %v2356_v9, %v2360_v11 }
 0x138   : > { %741 = vmax.xlane.f32.xlu1 %v740_v12  ;;  %v2364_v13 = vpop.f32.mrb[8].mxu0 }
 0x139   : > { %v2366_v14 = vpop.f32.mrb[9].mxu0 }
 0x13a   : > { %v2368_v15 = vpop.f32.mrb[10].mxu0  ;;  %v743_v16 = vmax.f32 %v2364_v13, %v2366_v14 }
 0x13b   : > { %v2372_v17 = vpop.f32.mrb[11].mxu0 }
 0x13c   : > { %744 = vmax.xlane.f32.xlu0 %v743_v16  ;;  %v746_v19 = vmax.f32 %v2368_v15, %v2372_v17  ;;  %v2046_v16 = vld [vmem:[%s2472_s26 + $0x60] sm:$0xff]  }
 0x13d   : > { %1929 = vmatprep.subr.bf16.mxu1 %v2046_v16 }
 0x13e   : > { %747 = vmax.xlane.f32.xlu1 %v746_v19  ;;  %v2047_v19 = vld [vmem:[%s2472_s26 + $0x20] sm:$0xff]  }
 0x13f   : > { %1930 = vmatpush3.bf16.msra.mxu1 %v2047_v19 }
 0x140   : > { %v2376_v20 = vpop.f32.mrb[12].mxu0 }
 0x141   : > { %v2378_v21 = vpop.f32.mrb[13].mxu0 }
 0x142   : > { %v2380_v22 = vpop.f32.mrb[14].mxu0  ;;  %v749_v23 = vmax.f32 %v2376_v20, %v2378_v21 }
 0x143   : > { %v2384_v24 = vpop.f32.mrb[15].mxu0 }
 0x144   : > { %750 = vmax.xlane.f32.xlu0 %v749_v23  ;;  %v752_v25 = vmax.f32 %v2380_v22, %v2384_v24  ;;  %v2509_v23 = vld [vmem:[#allocation2 + $0x18] sm:$0xff] }
 0x146   : > { %753 = vmax.xlane.f32.xlu1 %v752_v25 }
 0x148   : > { %v2420_v27 = vpop.f32.mrb[16].mxu0 }
 0x149   : > { %v2422_v28 = vpop.f32.mrb[17].mxu0 }
 0x14a   : > { %v2424_v29 = vpop.f32.mrb[18].mxu0  ;;  %v755_v30 = vmax.f32 %v2420_v27, %v2422_v28 }
 0x14b   : > { %v2428_v31 = vpop.f32.mrb[19].mxu0 }
 0x14c   : > { %756 = vmax.xlane.f32.xlu0 %v755_v30  ;;  %v758_v32 = vmax.f32 %v2424_v29, %v2428_v31  ;;  %v2048_v30 = vld [vmem:[%s2472_s26 + $0x68] sm:$0xff]  }
 0x14d   : > { %1931 = vmatprep.subr.bf16.mxu1 %v2048_v30 }
 0x14e   : > { %759 = vmax.xlane.f32.xlu1 %v758_v32 }
 0x150   : > { %v2432_v33 = vpop.f32.mrb[20].mxu0 }
 0x151   : > { %v2434_v34 = vpop.f32.mrb[21].mxu0 }
 0x152   : > { %v2436_v35 = vpop.f32.mrb[22].mxu0  ;;  %v761_v36 = vmax.f32 %v2432_v33, %v2434_v34 }
 0x153   : > { %v2440_v37 = vpop.f32.mrb[23].mxu0 }
 0x154   : > { %762 = vmax.xlane.f32.xlu0 %v761_v36  ;;  %v764_v38 = vmax.f32 %v2436_v35, %v2440_v37  ;;  %v2049_v36 = vld [vmem:[%s2472_s26 + $0x28] sm:$0xff]  }
 0x155   : > { %1932 = vmatpush3.bf16.msra.mxu1 %v2049_v36 }
 0x156   : > { %765 = vmax.xlane.f32.xlu1 %v764_v38  ;;  %v2521_v38 = vld [vmem:[#allocation2 + $0x20] sm:$0xff] }
 0x158   : > { %v2444_v39 = vpop.f32.mrb[24].mxu0 }
 0x159   : > { %v2446_v40 = vpop.f32.mrb[25].mxu0 }
 0x15a   : > { %v2448_v41 = vpop.f32.mrb[26].mxu0  ;;  %v767_v42 = vmax.f32 %v2444_v39, %v2446_v40 }
 0x15b   : > { %v2452_v43 = vpop.f32.mrb[27].mxu0 }
 0x15c   : > { %768 = vmax.xlane.f32.xlu0 %v767_v42  ;;  %v770_v44 = vmax.f32 %v2448_v41, %v2452_v43 }
 0x15e   : > { %771 = vmax.xlane.f32.xlu1 %v770_v44 }
 0x160   : > { %v2456_v45 = vpop.f32.mrb[28].mxu0 }
 0x161   : > { %v2458_v46 = vpop.f32.mrb[29].mxu0 }
 0x162   : > { %v2460_v47 = vpop.f32.mrb[30].mxu0  ;;  %v773_v48 = vmax.f32 %v2456_v45, %v2458_v46 }
 0x163   : > { %v2464_v49 = vpop.f32.mrb[31].mxu0 }
 0x164   : > { %v776_v50 = vmax.f32 %v2460_v47, %v2464_v49  ;;  %774 = vmax.xlane.f32.xlu0 %v773_v48  ;;  %v2528_v48 = vld [vmem:[#allocation2 + $0x28] sm:$0xff] }
 0x166   : > { %777 = vmax.xlane.f32.xlu1 %v776_v50  ;;  %v2050_v50 = vld [vmem:[%s2472_s26 + $0x70] sm:$0xff]  }
 0x167   : > { %1933 = vmatprep.subr.bf16.mxu1 %v2050_v50 }
 0x168   : > { %1934 = vmatpush3.bf16.msra.mxu1 %v2051_v52  ;;  %v2572_v52 = vld [vmem:[#allocation2 + $0x48] sm:$0xff] }
 0x169   : > { %1935 = vmatprep.subr.bf16.mxu1 %v2052_v56 }
 0x1b9   : > { %v733_v58 = vpop.xlane.xlu0 %732 }
 0x1ba   : > { %v2483_v59 = vmax.f32 %v2480_v57, %v733_v58  ;;  %v2612_v58 = vld [vmem:[#allocation2 + $0x68] sm:$0xff] }
 0x1bb   : > { %2872 = vst [vmem:[#allocation11_spill] sm:$0xff] %v2612_v58 }
 0x1bc   : > { %1517 = vst.msk [vmem:[#allocation2] sm:$0xff] %vm295_vm1, %v2483_v59  ;;  %845 = vperm.xlu0 %2020, %v2483_v59  }
 0x1bd   : > { %v736_v62 = vpop.xlane.xlu0 %735 }
 0x1be   : > { %v2494_v0 = vmax.f32 %v2485_v60, %v736_v62  ;;  %v2053_v62 = vld [vmem:[%s2472_s26 + $0x38] sm:$0xff]  }
 0x1bf   : > { %1936 = vmatpush3.bf16.msra.mxu1 %v2053_v62  ;;  %v2592_v62 = vld [vmem:[#allocation2 + $0x58] sm:$0xff] }
 0x1c0   : > { %1518 = vst.msk [vmem:[#allocation2 + $0x8] sm:$0xff] %vm295_vm1, %v2494_v0  ;;  %850 = vperm.xlu1 %2021, %v2494_v0   ;;  %2868 = vst [vmem:[#allocation7_spill] sm:$0xff] %v2592_v62 }
 0x1c1   : > { %v739_v12 = vpop.xlane.xlu1 %738 }
 0x1c2   : > { %v2506_v18 = vmax.f32 %v2497_v6, %v739_v12  ;;  %v2552_v12 = vld [vmem:[#allocation2 + $0x38] sm:$0xff] }
 0x1c4   : > { %1519 = vst.msk [vmem:[#allocation2 + $0x10] sm:$0xff] %vm295_vm1, %v2506_v18  ;;  %855 = vperm.xlu1 %2021, %v2506_v18  }
 0x1c5   : > { %v742_v26 = vpop.xlane.xlu1 %741 }
 0x1c6   : > { %v2518_v32 = vmax.f32 %v2509_v23, %v742_v26 }
 0x1c8   : > { %1520 = vst.msk [vmem:[#allocation2 + $0x18] sm:$0xff] %vm295_vm1, %v2518_v32  ;;  %860 = vperm.xlu1 %2021, %v2518_v32  }
 0x1c9   : > { %v745_v44 = vpop.xlane.xlu0 %744 }
 0x1ca   : > { %v2532_v51 = vmax.f32 %v2521_v38, %v745_v44  ;;  %v2569_v44 = vld [vmem:[#allocation2 + $0x40] sm:$0xff] }
 0x1cb   : > { %v748_v53 = vpop.xlane.xlu1 %747 }
 0x1cc   : > { %1521 = vst.msk [vmem:[#allocation2 + $0x20] sm:$0xff] %vm295_vm1, %v2532_v51  ;;  %v2540_v55 = vmax.f32 %v2528_v48, %v748_v53  ;;  %865 = vperm.xlu1 %2021, %v2532_v51  }
 0x1ce   : > { %1522 = vst.msk [vmem:[#allocation2 + $0x28] sm:$0xff] %vm295_vm1, %v2540_v55 }
 0x1d0   : > { %870 = vperm.xlu1 %2021, %v2540_v55  }
 0x1d1   : > { %v751_v4 = vpop.xlane.xlu0 %750 }
 0x1d2   : > { %v2555_v16 = vmax.f32 %v2549_v63, %v751_v4 }
 0x1d3   : > { %v754_v19 = vpop.xlane.xlu1 %753 }
 0x1d4   : > { %1523 = vst.msk [vmem:[#allocation2 + $0x30] sm:$0xff] %vm295_vm1, %v2555_v16  ;;  %v2562_v30 = vmax.f32 %v2552_v12, %v754_v19  ;;  %875 = vperm.xlu1 %2021, %v2555_v16  }
 0x1d6   : > { %1524 = vst.msk [vmem:[#allocation2 + $0x38] sm:$0xff] %vm295_vm1, %v2562_v30 }
 0x1d8   : > { %880 = vperm.xlu1 %2021, %v2562_v30  }
 0x1d9   : > { %v757_v50 = vpop.xlane.xlu0 %756 }
 0x1da   : > { %v2575_v53 = vmax.f32 %v2569_v44, %v757_v50  ;;  %v2590_v50 = vld [vmem:[#allocation2 + $0x50] sm:$0xff] }
 0x1db   : > { %v760_v56 = vpop.xlane.xlu1 %759  ;;  %2867 = vst [vmem:[#allocation6_spill] sm:$0xff] %v2590_v50 }
 0x1dc   : > { %1525 = vst.msk [vmem:[#allocation2 + $0x40] sm:$0xff] %vm295_vm1, %v2575_v53  ;;  %v2582_v4 = vmax.f32 %v2572_v52, %v760_v56  ;;  %885 = vperm.xlu1 %2021, %v2575_v53  }
 0x1de   : > { %2866 = vst [vmem:[#allocation5_spill] sm:$0xff] %v2582_v4  ;;  %1526 = vst.msk [vmem:[#allocation2 + $0x48] sm:$0xff] %vm295_vm1, %v2582_v4  ;;  %890 = vperm.xlu0 %2020, %v2582_v4  }
 0x1e1   : > { %v763_v36 = vpop.xlane.xlu0 %762 }
 0x1e2   : > { %v2595_v26 = vmax.f32 %v2590_v50, %v763_v36  ;;  %v2610_v36 = vld [vmem:[#allocation2 + $0x60] sm:$0xff] }
 0x1e3   : > { %v766_v56 = vpop.xlane.xlu1 %765  ;;  %2871 = vst [vmem:[#allocation10_spill] sm:$0xff] %v2610_v36 }
 0x1e4   : > { %2869 = vst [vmem:[#allocation8_spill] sm:$0xff] %v2595_v26  ;;  %1527 = vst.msk [vmem:[#allocation2 + $0x50] sm:$0xff] %vm295_vm1, %v2595_v26  ;;  %v2602_v19 = vmax.f32 %v2592_v62, %v766_v56  ;;  %895 = vperm.xlu1 %2021, %v2595_v26  }
 0x1e6   : > { %2870 = vst [vmem:[#allocation9_spill] sm:$0xff] %v2602_v19  ;;  %1528 = vst.msk [vmem:[#allocation2 + $0x58] sm:$0xff] %vm295_vm1, %v2602_v19  ;;  %900 = vperm.xlu0 %2020, %v2602_v19  }
 0x1e9   : > { %v769_v42 = vpop.xlane.xlu0 %768 }
 0x1ea   : > { %v2615_v25 = vmax.f32 %v2610_v36, %v769_v42  ;;  %v2630_v42 = vld [vmem:[#allocation2 + $0x70] sm:$0xff] }
 0x1eb   : > { %v772_v56 = vpop.xlane.xlu1 %771  ;;  %2875 = vst [vmem:[#allocation14_spill] sm:$0xff] %v2630_v42 }
 0x1ec   : > { %2873 = vst [vmem:[#allocation12_spill] sm:$0xff] %v2615_v25  ;;  %1529 = vst.msk [vmem:[#allocation2 + $0x60] sm:$0xff] %vm295_vm1, %v2615_v25  ;;  %v2622_v54 = vmax.f32 %v2612_v58, %v772_v56  ;;  %905 = vperm.xlu1 %2021, %v2615_v25  }
 0x1ee   : > { %2874 = vst [vmem:[#allocation13_spill] sm:$0xff] %v2622_v54  ;;  %1530 = vst.msk [vmem:[#allocation2 + $0x68] sm:$0xff] %vm295_vm1, %v2622_v54  ;;  %910 = vperm.xlu0 %2020, %v2622_v54  }
 0x1f1   : > { %v775_v19 = vpop.xlane.xlu0 %774 }
 0x1f2   : > { %v2635_v36 = vmax.f32 %v2630_v42, %v775_v19 }
 0x1f3   : > { %v778_v56 = vpop.xlane.xlu1 %777 }
 0x1f4   : > { %2877 = vst [vmem:[#allocation16_spill] sm:$0xff] %v2635_v36  ;;  %1531 = vst.msk [vmem:[#allocation2 + $0x70] sm:$0xff] %vm295_vm1, %v2635_v36  ;;  %v2642_v10 = vmax.f32 %v2632_v61, %v778_v56  ;;  %915 = vperm.xlu1 %2021, %v2635_v36  }
 0x1f6   : > { %2878 = vst [vmem:[#allocation17_spill] sm:$0xff] %v2642_v10  ;;  %1532 = vst.msk [vmem:[#allocation2 + $0x78] sm:$0xff] %vm295_vm1, %v2642_v10  ;;  %920 = vperm.xlu0 %2020, %v2642_v10  }
 0x23b   : > { %v846_v19 = vpop.permute.xlu0 %845 }
 0x23c   : > { %v923_v58 = vsub.f32 %v2340_v1, %v846_v19  ;;  %v924_v25 = vsub.f32 %v2342_v2, %v846_v19 }
 0x23e   : > { %v955_v42 = vmul.f32 1.442695, %v923_v58  ;;  %v957_v62 = vmul.f32 1.442695, %v924_v25 }
 0x23f   : > { %v851_v26 = vpop.permute.xlu1 %850 }
 0x240   : > { %2054 = vpow2.f32 %v955_v42  ;;  %v925_v56 = vsub.f32 %v2344_v3, %v851_v26  ;;  %v926_v36 = vsub.f32 %v2348_v5, %v851_v26 }
 0x241   : > { %2056 = vpow2.f32 %v957_v62 }
 0x242   : > { %v959_v54 = vmul.f32 1.442695, %v925_v56  ;;  %v961_v61 = vmul.f32 1.442695, %v926_v36 }
 0x243   : > { %v856_v50 = vpop.permute.xlu1 %855 }
 0x244   : > { %2058 = vpow2.f32 %v959_v54  ;;  %v927_v10 = vsub.f32 %v2352_v7, %v856_v50  ;;  %v928_v4 = vsub.f32 %v2354_v8, %v856_v50 }
 0x245   : > { %2060 = vpow2.f32 %v961_v61 }
 0x246   : > { %v963_v1 = vmul.f32 1.442695, %v927_v10  ;;  %v965_v2 = vmul.f32 1.442695, %v928_v4 }
 0x247   : > { %v861_v58 = vpop.permute.xlu1 %860 }
 0x248   : > { %2062 = vpow2.f32 %v963_v1  ;;  %v929_v25 = vsub.f32 %v2356_v9, %v861_v58  ;;  %v930_v3 = vsub.f32 %v2360_v11, %v861_v58 }
 0x249   : > { %2064 = vpow2.f32 %v965_v2 }
 0x24a   : > { %v2055_v5 = vpop.eup %2054  ;;  %v967_v26 = vmul.f32 1.442695, %v929_v25  ;;  %v969_v62 = vmul.f32 1.442695, %v930_v3 }
 0x24b   : > { %v2057_v36 = vpop.eup %2056  ;;  %v866_v42 = vpop.permute.xlu1 %865 }
 0x24c   : > { %2066 = vpow2.f32 %v967_v26  ;;  %v931_v7 = vsub.f32 %v2364_v13, %v866_v42  ;;  %v932_v8 = vsub.f32 %v2366_v14, %v866_v42  ;;  %v1051_v61 = vadd.f32 %v2057_v36, %v2055_v5 }
 0x24d   : > { %2068 = vpow2.f32 %v969_v62 }
 0x24e   : > { %v2059_v10 = vpop.eup %2058  ;;  %v971_v54 = vmul.f32 1.442695, %v931_v7  ;;  %v973_v4 = vmul.f32 1.442695, %v932_v8  ;;  %1052 = vadd.xlane.f32.xlu1 %v1051_v61 }
 0x24f   : > { %v2061_v9 = vpop.eup %2060  ;;  %v871_v50 = vpop.permute.xlu1 %870  ;;  %v1244_v11 = vpack.c.bf16 %v2059_v10, %v2055_v5 }
 0x250   : > { %2070 = vpow2.f32 %v971_v54  ;;  %v933_v19 = vsub.f32 %v2368_v15, %v871_v50  ;;  %v934_v56 = vsub.f32 %v2372_v17, %v871_v50  ;;  %v1245_v1 = vpack.c.bf16 %v2061_v9, %v2057_v36 }
 0x251   : > { %2072 = vpow2.f32 %v973_v4  ;;  %v1054_v2 = vadd.f32 %v2061_v9, %v2059_v10 }
 0x252   : > { %v2063_v13 = vpop.eup %2062  ;;  %v975_v58 = vmul.f32 1.442695, %v933_v19  ;;  %v977_v14 = vmul.f32 1.442695, %v934_v56  ;;  %1420 = vmatprep.mubr.bf16.mxu1 %v1245_v1 }
 0x253   : > { %v2065_v25 = vpop.eup %2064  ;;  %1055 = vadd.xlane.f32.xlu0 %v1054_v2  ;;  %1421 = vmatmul.mubr.bf16.vlgmr.msra.gmra.mrb[0].mxu1 %v1244_v11  ;;  %v876_v3 = vpop.permute.xlu1 %875 }
 0x254   : > { %2074 = vpow2.f32 %v975_v58  ;;  %v935_v26 = vsub.f32 %v2376_v20, %v876_v3  ;;  %v936_v5 = vsub.f32 %v2378_v21, %v876_v3  ;;  %v1057_v62 = vadd.f32 %v2065_v25, %v2063_v13 }
 0x255   : > { %2076 = vpow2.f32 %v977_v14 }
 0x256   : > { %v2067_v15 = vpop.eup %2066  ;;  %v979_v17 = vmul.f32 1.442695, %v935_v26  ;;  %v981_v36 = vmul.f32 1.442695, %v936_v5 }
 0x257   : > { %v2069_v42 = vpop.eup %2068  ;;  %1058 = vadd.xlane.f32.xlu0 %v1057_v62  ;;  %v881_v7 = vpop.permute.xlu1 %880  ;;  %v1246_v8 = vpack.c.bf16 %v2067_v15, %v2063_v13 }
 0x258   : > { %2078 = vpow2.f32 %v979_v17  ;;  %v937_v61 = vsub.f32 %v2380_v22, %v881_v7  ;;  %v938_v10 = vsub.f32 %v2384_v24, %v881_v7  ;;  %v1247_v54 = vpack.c.bf16 %v2069_v42, %v2065_v25 }
 0x259   : > { %2080 = vpow2.f32 %v981_v36  ;;  %v1060_v4 = vadd.f32 %v2069_v42, %v2067_v15 }
 0x25a   : > { %v2071_v20 = vpop.eup %2070  ;;  %v983_v9 = vmul.f32 1.442695, %v937_v61  ;;  %v985_v21 = vmul.f32 1.442695, %v938_v10  ;;  %1428 = vmatprep.mubr.bf16.mxu1 %v1247_v54 }
 0x25b   : > { %v2073_v50 = vpop.eup %2072  ;;  %1061 = vadd.xlane.f32.xlu1 %v1060_v4  ;;  %1429 = vmatmul.mubr.bf16.gmra.mrb[4].mxu1 %v1246_v8  ;;  %v886_v11 = vpop.permute.xlu1 %885 }
 0x25c   : > { %2082 = vpow2.f32 %v983_v9  ;;  %v939_v19 = vsub.f32 %v2420_v27, %v886_v11  ;;  %v940_v56 = vsub.f32 %v2422_v28, %v886_v11  ;;  %v1063_v1 = vadd.f32 %v2073_v50, %v2071_v20 }
 0x25d   : > { %2084 = vpow2.f32 %v985_v21  ;;  %v891_v22 = vpop.permute.xlu0 %890 }
 0x25e   : > { %v2075_v24 = vpop.eup %2074  ;;  %v987_v2 = vmul.f32 1.442695, %v939_v19  ;;  %v989_v13 = vmul.f32 1.442695, %v940_v56  ;;  %v941_v58 = vsub.f32 %v2424_v29, %v891_v22  ;;  %v942_v14 = vsub.f32 %v2428_v31, %v891_v22  ;;  %1064 = vadd.xlane.f32.xlu0 %v1063_v1 }
 0x25f   : > { %v2077_v25 = vpop.eup %2076  ;;  %v1248_v3 = vpack.c.bf16 %v2075_v24, %v2071_v20 }
 0x260   : > { %2086 = vpow2.f32 %v987_v2  ;;  %v991_v26 = vmul.f32 1.442695, %v941_v58  ;;  %v993_v5 = vmul.f32 1.442695, %v942_v14  ;;  %v1249_v62 = vpack.c.bf16 %v2077_v25, %v2073_v50 }
 0x261   : > { %2088 = vpow2.f32 %v989_v13  ;;  %v1066_v27 = vadd.f32 %v2077_v25, %v2075_v24 }
 0x262   : > { %v2079_v28 = vpop.eup %2078  ;;  %2090 = vpow2.f32 %v991_v26  ;;  %1436 = vmatprep.mubr.bf16.mxu1 %v1249_v62 }
 0x263   : > { %v2081_v15 = vpop.eup %2080  ;;  %2092 = vpow2.f32 %v993_v5  ;;  %1067 = vadd.xlane.f32.xlu1 %v1066_v27  ;;  %1437 = vmatmul.mubr.bf16.gmra.mrb[8].mxu1 %v1248_v3  ;;  %v896_v17 = vpop.permute.xlu1 %895 }
 0x264   : > { %v943_v29 = vsub.f32 %v2432_v33, %v896_v17  ;;  %v944_v31 = vsub.f32 %v2434_v34, %v896_v17  ;;  %v1069_v36 = vadd.f32 %v2081_v15, %v2079_v28 }
 0x265   : > { %v901_v42 = vpop.permute.xlu0 %900 }
 0x266   : > { %v2083_v7 = vpop.eup %2082  ;;  %v995_v8 = vmul.f32 1.442695, %v943_v29  ;;  %v997_v61 = vmul.f32 1.442695, %v944_v31  ;;  %v945_v10 = vsub.f32 %v2436_v35, %v901_v42  ;;  %v946_v54 = vsub.f32 %v2440_v37, %v901_v42  ;;  %1070 = vadd.xlane.f32.xlu0 %v1069_v36 }
 0x267   : > { %v2085_v4 = vpop.eup %2084  ;;  %v1250_v20 = vpack.c.bf16 %v2083_v7, %v2079_v28 }
 0x268   : > { %2094 = vpow2.f32 %v995_v8  ;;  %v999_v9 = vmul.f32 1.442695, %v945_v10  ;;  %v1001_v21 = vmul.f32 1.442695, %v946_v54  ;;  %v1251_v50 = vpack.c.bf16 %v2085_v4, %v2081_v15 }
 0x269   : > { %2096 = vpow2.f32 %v997_v61  ;;  %v1072_v33 = vadd.f32 %v2085_v4, %v2083_v7 }
 0x26a   : > { %v2087_v11 = vpop.eup %2086  ;;  %2098 = vpow2.f32 %v999_v9  ;;  %1444 = vmatprep.mubr.bf16.mxu1 %v1251_v50 }
 0x26b   : > { %v2089_v34 = vpop.eup %2088  ;;  %2100 = vpow2.f32 %v1001_v21  ;;  %1073 = vadd.xlane.f32.xlu1 %v1072_v33  ;;  %1445 = vmatmul.mubr.bf16.gmra.mrb[12].mxu1 %v1250_v20  ;;  %v906_v19 = vpop.permute.xlu1 %905 }
 0x26c   : > { %v2091_v35 = vpop.eup %2090  ;;  %v947_v37 = vsub.f32 %v2444_v39, %v906_v19  ;;  %v948_v56 = vsub.f32 %v2446_v40, %v906_v19  ;;  %v1075_v1 = vadd.f32 %v2089_v34, %v2087_v11 }
 0x26d   : > { %v2093_v22 = vpop.eup %2092  ;;  %v911_v24 = vpop.permute.xlu0 %910  ;;  %v1252_v2 = vpack.c.bf16 %v2091_v35, %v2087_v11 }
 0x26e   : > { %v1003_v13 = vmul.f32 1.442695, %v947_v37  ;;  %v1005_v58 = vmul.f32 1.442695, %v948_v56  ;;  %v949_v14 = vsub.f32 %v2448_v41, %v911_v24  ;;  %v950_v25 = vsub.f32 %v2452_v43, %v911_v24  ;;  %1076 = vadd.xlane.f32.xlu0 %v1075_v1 }
 0x26f   : > { %v1078_v3 = vadd.f32 %v2093_v22, %v2091_v35  ;;  %v1253_v26 = vpack.c.bf16 %v2093_v22, %v2089_v34  ;;  %v2879_v22 = vsub.f32 %v2485_v60, %v2494_v0  ;;  %v2883_v60 = vsub.f32 %v2521_v38, %v2532_v51 }
 0x270   : > { %2102 = vpow2.f32 %v1003_v13  ;;  %v1007_v5 = vmul.f32 1.442695, %v949_v14  ;;  %v1009_v62 = vmul.f32 1.442695, %v950_v25  ;;  %v2882_v25 = vsub.f32 %v2509_v23, %v2518_v32 }
 0x271   : > { %2104 = vpow2.f32 %v1005_v58  ;;  %1079 = vadd.xlane.f32.xlu1 %v1078_v3  ;;  %1452 = vmatprep.mubr.bf16.mxu1 %v1253_v26  ;;  %v813_v24 = vmul.f32 1.442695, %v2879_v22  ;;  %v2881_v58 = vsub.f32 %v2497_v6, %v2506_v18  ;;  %v819_v0 = vmul.f32 1.442695, %v2883_v60  ;;  %v1022_v60 = vld [vmem:[#allocation3 + $0x18] sm:$0xff] }
 0x272   : > { %v2095_v39 = vpop.eup %2094  ;;  %2106 = vpow2.f32 %v1007_v5  ;;  %v817_v3 = vmul.f32 1.442695, %v2882_v25  ;;  %v2885_v6 = vsub.f32 %v2549_v63, %v2555_v16  ;;  %v2886_v23 = vsub.f32 %v2552_v12, %v2562_v30 }
 0x273   : > { %v2097_v40 = vpop.eup %2096  ;;  %2108 = vpow2.f32 %v1009_v62  ;;  %1453 = vmatmul.mubr.bf16.gmra.mrb[16].mxu1 %v1252_v2  ;;  %v916_v27 = vpop.permute.xlu1 %915  ;;  %v2880_v2 = vsub.f32 %v2480_v57, %v2483_v59  ;;  %v815_v14 = vmul.f32 1.442695, %v2881_v58  ;;  %v2884_v57 = vsub.f32 %v2528_v48, %v2540_v55  ;;  %v2888_v55 = vld [vmem:[#allocation5_spill] sm:$0xff]  ;;  %v2890_v62 = vld [vmem:[#allocation6_spill] sm:$0xff]  ;;  %v1021_v58 = vld [vmem:[#allocation3 + $0x10] sm:$0xff] }
 0x274   : > { %v2099_v28 = vpop.eup %2098  ;;  %v951_v41 = vsub.f32 %v2456_v45, %v916_v27  ;;  %v952_v43 = vsub.f32 %v2458_v46, %v916_v27  ;;  %v1081_v15 = vadd.f32 %v2097_v40, %v2095_v39  ;;  %v823_v18 = vmul.f32 1.442695, %v2885_v6  ;;  %v1023_v6 = vld [vmem:[#allocation3 + $0x20] sm:$0xff] }
 0x275   : > { %v2101_v17 = vpop.eup %2100  ;;  %v921_v29 = vpop.permute.xlu0 %920  ;;  %v1254_v31 = vpack.c.bf16 %v2099_v28, %v2095_v39  ;;  %v811_v13 = vmul.f32 1.442695, %v2880_v2  ;;  %v821_v59 = vmul.f32 1.442695, %v2884_v57  ;;  %v825_v32 = vmul.f32 1.442695, %v2886_v23 }
 0x276   : > { %v1011_v36 = vmul.f32 1.442695, %v951_v41  ;;  %v1013_v42 = vmul.f32 1.442695, %v952_v43  ;;  %v953_v7 = vsub.f32 %v2460_v47, %v921_v29  ;;  %v954_v8 = vsub.f32 %v2464_v49, %v921_v29  ;;  %1082 = vadd.xlane.f32.xlu0 %v1081_v15  ;;  %v2891_v39 = vld [vmem:[#allocation8_spill] sm:$0xff]  ;;  %v2896_v43 = vld [vmem:[#allocation10_spill] sm:$0xff] }
 0x277   : > { %v1084_v61 = vadd.f32 %v2101_v17, %v2099_v28  ;;  %v1255_v10 = vpack.c.bf16 %v2101_v17, %v2097_v40  ;;  %v2887_v38 = vsub.f32 %v2569_v44, %v2575_v53  ;;  %v2889_v63 = vsub.f32 %v2572_v52, %v2888_v55  ;;  %v2893_v44 = vld [vmem:[#allocation7_spill] sm:$0xff]  ;;  %v2894_v53 = vld [vmem:[#allocation9_spill] sm:$0xff]  ;;  %v2897_v15 = vld [vmem:[#allocation12_spill] sm:$0xff] }
 0x278   : > { %2110 = vpow2.f32 %v1011_v36  ;;  %v1015_v54 = vmul.f32 1.442695, %v953_v7  ;;  %v1017_v4 = vmul.f32 1.442695, %v954_v8  ;;  %v2892_v12 = vsub.f32 %v2890_v62, %v2891_v39  ;;  %v2899_v36 = vld [vmem:[#allocation11_spill] sm:$0xff] }
 0x279   : > { %2112 = vpow2.f32 %v1013_v42  ;;  %1085 = vadd.xlane.f32.xlu1 %v1084_v61  ;;  %1460 = vmatprep.mubr.bf16.mxu1 %v1255_v10  ;;  %v827_v51 = vmul.f32 1.442695, %v2887_v38  ;;  %v829_v16 = vmul.f32 1.442695, %v2889_v63  ;;  %v2895_v28 = vsub.f32 %v2893_v44, %v2894_v53  ;;  %v2900_v42 = vld [vmem:[#allocation13_spill] sm:$0xff]  ;;  %v2902_v61 = vld [vmem:[#allocation14_spill] sm:$0xff] }
 0x27a   : > { %v2103_v45 = vpop.eup %2102  ;;  %2114 = vpow2.f32 %v1015_v54  ;;  %v831_v30 = vmul.f32 1.442695, %v2892_v12  ;;  %v2898_v52 = vsub.f32 %v2896_v43, %v2897_v15  ;;  %v2901_v7 = vsub.f32 %v2899_v36, %v2900_v42  ;;  %v2903_v10 = vld [vmem:[#allocation16_spill] sm:$0xff]  ;;  %v1025_v63 = vld [vmem:[#allocation3 + $0x30] sm:$0xff]  ;;  %v1027_v43 = vld [vmem:[#allocation3 + $0x40] sm:$0xff] }
 0x27b   : > { %v2105_v46 = vpop.eup %2104  ;;  %2116 = vpow2.f32 %v1017_v4  ;;  %1461 = vmatmul.mubr.bf16.gmra.mrb[20].mxu1 %v1254_v31  ;;  %v833_v41 = vmul.f32 1.442695, %v2895_v28  ;;  %v2904_v54 = vsub.f32 %v2902_v61, %v2903_v10  ;;  %v1026_v44 = vld [vmem:[#allocation3 + $0x38] sm:$0xff] }
 0x27c   : > { %v2107_v20 = vpop.eup %2106  ;;  %v1087_v9 = vadd.f32 %v2105_v46, %v2103_v45  ;;  %2118 = vpow2.f32 %v813_v24  ;;  %v835_v17 = vmul.f32 1.442695, %v2898_v52  ;;  %v837_v8 = vmul.f32 1.442695, %v2901_v7  ;;  %v1020_v24 = vld [vmem:[#allocation3 + $0x8] sm:$0xff] }
 0x27d   : > { %v2109_v21 = vpop.eup %2108  ;;  %v1256_v47 = vpack.c.bf16 %v2107_v20, %v2103_v45  ;;  %2120 = vpow2.f32 %v811_v13  ;;  %v839_v4 = vmul.f32 1.442695, %v2904_v54 }
 0x27e   : > { %1088 = vadd.xlane.f32.xlu0 %v1087_v9  ;;  %v1090_v49 = vadd.f32 %v2109_v21, %v2107_v20  ;;  %v1257_v50 = vpack.c.bf16 %v2109_v21, %v2105_v46  ;;  %2122 = vpow2.f32 %v815_v14  ;;  %v2905_v20 = vld [vmem:[#allocation15_spill] sm:$0xff]  ;;  %v2906_v9 = vld [vmem:[#allocation17_spill] sm:$0xff] }
 0x27f   : > { %2124 = vpow2.f32 %v817_v3  ;;  %v2907_v21 = vsub.f32 %v2905_v20, %v2906_v9  ;;  %v1030_v9 = vld [vmem:[#allocation3 + $0x58] sm:$0xff] }
 0x280   : > { %1091 = vadd.xlane.f32.xlu1 %v1090_v49  ;;  %1468 = vmatprep.mubr.bf16.mxu1 %v1257_v50  ;;  %2126 = vpow2.f32 %v819_v0 }
 0x281   : > { %2128 = vpow2.f32 %v821_v59 }
 0x282   : > { %v2111_v33 = vpop.eup %2110  ;;  %2130 = vpow2.f32 %v823_v18 }
 0x283   : > { %v2113_v11 = vpop.eup %2112  ;;  %1469 = vmatmul.mubr.bf16.gmra.mrb[24].mxu1 %v1256_v47  ;;  %2132 = vpow2.f32 %v825_v32  ;;  %v841_v47 = vmul.f32 1.442695, %v2907_v21 }
 0x284   : > { %v2115_v34 = vpop.eup %2114  ;;  %v1093_v19 = vadd.f32 %v2113_v11, %v2111_v33  ;;  %2134 = vpow2.f32 %v827_v51 }
 0x285   : > { %v2117_v35 = vpop.eup %2116  ;;  %v1258_v37 = vpack.c.bf16 %v2115_v34, %v2111_v33  ;;  %2136 = vpow2.f32 %v829_v16 }
 0x286   : > { %1094 = vadd.xlane.f32.xlu0 %v1093_v19  ;;  %v1096_v56 = vadd.f32 %v2117_v35, %v2115_v34  ;;  %v1259_v1 = vpack.c.bf16 %v2117_v35, %v2113_v11  ;;  %v2119_v26 = vpop.eup %2118  ;;  %2138 = vpow2.f32 %v831_v30 }
 0x287   : > { %v2121_v5 = vpop.eup %2120  ;;  %2140 = vpow2.f32 %v833_v41  ;;  %v1036_v2 = vmul.f32 %v2119_v26, %v1020_v24 }
 0x288   : > { %1097 = vadd.xlane.f32.xlu1 %v1096_v56  ;;  %1476 = vmatprep.mubr.bf16.mxu1 %v1259_v1  ;;  %v2123_v48 = vpop.eup %2122  ;;  %2142 = vpow2.f32 %v835_v17 }
 0x289   : > { %v2125_v40 = vpop.eup %2124  ;;  %2144 = vpow2.f32 %v837_v8  ;;  %v1037_v25 = vmul.f32 %v2123_v48, %v1021_v58 }
 0x28a   : > { %v2127_v27 = vpop.eup %2126  ;;  %2146 = vpow2.f32 %v839_v4  ;;  %v1038_v59 = vmul.f32 %v2125_v40, %v1022_v60 }
 0x28b   : > { %1477 = vmatmul.mubr.bf16.gmra.mrb[28].mxu1 %v1258_v37  ;;  %v2129_v29 = vpop.eup %2128  ;;  %2148 = vpow2.f32 %v841_v47  ;;  %v1019_v37 = vld [vmem:[#allocation3] sm:$0xff]  ;;  %v1039_v32 = vmul.f32 %v2127_v27, %v1023_v6  ;;  %v1033_v6 = vld [vmem:[#allocation3 + $0x70] sm:$0xff] }
 0x28c   : > { %v2721_v31 = vpop.eup %2130  ;;  %v1035_v56 = vmul.f32 %v2121_v5, %v1019_v37 }
 0x28d   : > { %v2730_v45 = vpop.eup %2132  ;;  %v1041_v12 = vmul.f32 %v2721_v31, %v1025_v63 }
 0x28e   : > { %v2732_v46 = vpop.eup %2134  ;;  %v1042_v41 = vmul.f32 %v2730_v45, %v1026_v44  ;;  %v1133_v44 = vld [vmem:[#allocation4 + $0x8] sm:$0xff] }
 0x28f   : > { %v2739_v49 = vpop.eup %2136 }
 0x290   : > { %v2741_v50 = vpop.eup %2138 }
 0x291   : > { %v2745_v33 = vpop.eup %2140 }
 0x292   : > { %v2747_v11 = vpop.eup %2142 }
 0x293   : > { %v2751_v34 = vpop.eup %2144 }
 0x294   : > { %v2753_v19 = vpop.eup %2146 }
 0x295   : > { %v2757_v35 = vpop.eup %2148 }
 0x299   : > { %1155 = vperm.xlu1 %2021, %v2119_v26  }
 0x29c   : > { %1150 = vperm.xlu0 %2020, %v2121_v5   ;;  %v1024_v5 = vld [vmem:[#allocation3 + $0x28] sm:$0xff] }
 0x29d   : > { %1160 = vperm.xlu1 %2021, %v2123_v48   ;;  %v1040_v55 = vmul.f32 %v2129_v29, %v1024_v5 }
 0x2a0   : > { %1165 = vperm.xlu0 %2020, %v2125_v40  }
 0x2a1   : > { %1170 = vperm.xlu1 %2021, %v2127_v27  }
 0x2a4   : > { %1175 = vperm.xlu0 %2020, %v2129_v29   ;;  %v1043_v29 = vmul.f32 %v2732_v46, %v1027_v43 }
 0x2a5   : > { %1180 = vperm.xlu1 %2021, %v2721_v31   ;;  %v1028_v31 = vld [vmem:[#allocation3 + $0x48] sm:$0xff] }
 0x2a6   : > { %v1044_v61 = vmul.f32 %v2739_v49, %v1028_v31 }
 0x2a8   : > { %1185 = vperm.xlu0 %2020, %v2730_v45   ;;  %v1029_v45 = vld [vmem:[#allocation3 + $0x50] sm:$0xff] }
 0x2a9   : > { %1190 = vperm.xlu1 %2021, %v2732_v46   ;;  %v1045_v46 = vmul.f32 %v2741_v50, %v1029_v45 }
 0x2ac   : > { %1195 = vperm.xlu0 %2020, %v2739_v49  }
 0x2ad   : > { %1200 = vperm.xlu1 %2021, %v2741_v50   ;;  %v1032_v50 = vld [vmem:[#allocation3 + $0x68] sm:$0xff] }
 0x2b0   : > { %1205 = vperm.xlu0 %2020, %v2745_v33  }
 0x2b1   : > { %1210 = vperm.xlu1 %2021, %v2747_v11  }
 0x2b4   : > { %1215 = vperm.xlu0 %2020, %v2751_v34  }
 0x2b5   : > { %1220 = vperm.xlu1 %2021, %v2753_v19  }
 0x2b8   : > { %1225 = vperm.xlu0 %2020, %v2757_v35  }
 0x2db   : > { %v1053_v1 = vpop.xlane.xlu1 %1052 }
 0x2dc   : > { %v1099_v22 = vadd.f32 %v1053_v1, %v1035_v56  ;;  %v1046_v56 = vmul.f32 %v2745_v33, %v1030_v9  ;;  %v1048_v33 = vmul.f32 %v2751_v34, %v1032_v50 }
 0x2de   : > { %1116 = vst.msk [vmem:[#allocation3] sm:$0xff] %vm295_vm1, %v1099_v22 }
 0x2e0   : > { %v1056_v13 = vpop.xlane.xlu0 %1055 }
 0x2e1   : > { %v1100_v14 = vadd.f32 %v1056_v13, %v1036_v2  ;;  %v1031_v2 = vld [vmem:[#allocation3 + $0x60] sm:$0xff] }
 0x2e3   : > { %1117 = vst.msk [vmem:[#allocation3 + $0x8] sm:$0xff] %vm295_vm1, %v1100_v14  ;;  %v1047_v14 = vmul.f32 %v2747_v11, %v1031_v2  ;;  %v1049_v11 = vmul.f32 %v2753_v19, %v1033_v6  ;;  %v1137_v2 = vld [vmem:[#allocation4 + $0x28] sm:$0xff] }
 0x2e4   : > { %v1059_v3 = vpop.xlane.xlu0 %1058 }
 0x2e5   : > { %v1101_v0 = vadd.f32 %v1059_v3, %v1037_v25  ;;  %v1536_v57 = vld [vmem:[#allocation3] sm:$0xff] }
 0x2e6   : > { %2150 = vrcp.f32 %v1536_v57 }
 0x2e7   : > { %1118 = vst.msk [vmem:[#allocation3 + $0x10] sm:$0xff] %vm295_vm1, %v1101_v0 }
 0x2e8   : > { %v1062_v18 = vpop.xlane.xlu1 %1061 }
 0x2e9   : > { %v1102_v23 = vadd.f32 %v1062_v18, %v1038_v59 }
 0x2ea   : > { %v1537_v38 = vld [vmem:[#allocation3 + $0x8] sm:$0xff] }
 0x2eb   : > { %1119 = vst.msk [vmem:[#allocation3 + $0x18] sm:$0xff] %vm295_vm1, %v1102_v23  ;;  %v1065_v26 = vpop.xlane.xlu0 %1064  ;;  %2152 = vrcp.f32 %v1537_v38 }
 0x2ec   : > { %v1103_v51 = vadd.f32 %v1065_v26, %v1039_v32  ;;  %v1034_v32 = vld [vmem:[#allocation3 + $0x78] sm:$0xff] }
 0x2ee   : > { %1120 = vst.msk [vmem:[#allocation3 + $0x20] sm:$0xff] %vm295_vm1, %v1103_v51  ;;  %v1538_v48 = vld [vmem:[#allocation3 + $0x10] sm:$0xff]  ;;  %v1050_v51 = vmul.f32 %v2757_v35, %v1034_v32 }
 0x2ef   : > { %2154 = vrcp.f32 %v1538_v48 }
 0x2f0   : > { %v2151_v16 = vpop.eup %2150  ;;  %v1068_v62 = vpop.xlane.xlu1 %1067 }
 0x2f1   : > { %v1104_v39 = vadd.f32 %v1068_v62, %v1040_v55  ;;  %1586 = vperm.xlu1 %2021, %v2151_v16  }
 0x2f2   : > { %v1539_v30 = vld [vmem:[#allocation3 + $0x18] sm:$0xff] }
 0x2f3   : > { %1121 = vst.msk [vmem:[#allocation3 + $0x28] sm:$0xff] %vm295_vm1, %v1104_v39  ;;  %v1071_v40 = vpop.xlane.xlu0 %1070  ;;  %2156 = vrcp.f32 %v1539_v30  ;;  %v1132_v30 = vld [vmem:[#allocation4] sm:$0xff] }
 0x2f4   : > { %v1105_v27 = vadd.f32 %v1071_v40, %v1041_v12 }
 0x2f5   : > { %v2153_v53 = vpop.eup %2152  ;;  %v1540_v28 = vld [vmem:[#allocation3 + $0x20] sm:$0xff] }
 0x2f6   : > { %1122 = vst.msk [vmem:[#allocation3 + $0x30] sm:$0xff] %vm295_vm1, %v1105_v27  ;;  %1591 = vperm.xlu0 %2020, %v2153_v53   ;;  %2158 = vrcp.f32 %v1540_v28 }
 0x2f8   : > { %v1074_v15 = vpop.xlane.xlu1 %1073 }
 0x2f9   : > { %v2155_v52 = vpop.eup %2154  ;;  %v1106_v17 = vadd.f32 %v1074_v15, %v1042_v41 }
 0x2fa   : > { %1596 = vperm.xlu1 %2021, %v2155_v52   ;;  %v1541_v36 = vld [vmem:[#allocation3 + $0x28] sm:$0xff] }
 0x2fb   : > { %1123 = vst.msk [vmem:[#allocation3 + $0x38] sm:$0xff] %vm295_vm1, %v1106_v17  ;;  %v1077_v42 = vpop.xlane.xlu0 %1076  ;;  %2160 = vrcp.f32 %v1541_v36 }
 0x2fc   : > { %v1107_v7 = vadd.f32 %v1077_v42, %v1043_v29 }
 0x2fd   : > { %v2157_v8 = vpop.eup %2156  ;;  %v1542_v10 = vld [vmem:[#allocation3 + $0x30] sm:$0xff] }
 0x2fe   : > { %1124 = vst.msk [vmem:[#allocation3 + $0x40] sm:$0xff] %vm295_vm1, %v1107_v7  ;;  %1601 = vperm.xlu0 %2020, %v2157_v8   ;;  %v1080_v54 = vpop.xlane.xlu1 %1079  ;;  %2162 = vrcp.f32 %v1542_v10  ;;  %v1134_v8 = vld [vmem:[#allocation4 + $0x10] sm:$0xff] }
 0x2ff   : > { %v1108_v4 = vadd.f32 %v1080_v54, %v1044_v61  ;;  %v1135_v54 = vld [vmem:[#allocation4 + $0x18] sm:$0xff] }
 0x300   : > { %v2159_v20 = vpop.eup %2158 }
 0x301   : > { %1125 = vst.msk [vmem:[#allocation3 + $0x48] sm:$0xff] %vm295_vm1, %v1108_v4  ;;  %1606 = vperm.xlu1 %2021, %v2159_v20  }
 0x302   : > { %v1543_v21 = vld [vmem:[#allocation3 + $0x38] sm:$0xff] }
 0x303   : > { %v1083_v47 = vpop.xlane.xlu0 %1082  ;;  %2164 = vrcp.f32 %v1543_v21 }
 0x304   : > { %v1109_v37 = vadd.f32 %v1083_v47, %v1045_v46 }
 0x305   : > { %v2161_v49 = vpop.eup %2160  ;;  %v1544_v1 = vld [vmem:[#allocation3 + $0x40] sm:$0xff] }
 0x306   : > { %1126 = vst.msk [vmem:[#allocation3 + $0x50] sm:$0xff] %vm295_vm1, %v1109_v37  ;;  %1611 = vperm.xlu0 %2020, %v2161_v49   ;;  %v1086_v22 = vpop.xlane.xlu1 %1085  ;;  %2166 = vrcp.f32 %v1544_v1  ;;  %v1136_v1 = vld [vmem:[#allocation4 + $0x20] sm:$0xff] }
 0x307   : > { %v1110_v24 = vadd.f32 %v1086_v22, %v1046_v56 }
 0x308   : > { %v2163_v13 = vpop.eup %2162  ;;  %v1545_v58 = vld [vmem:[#allocation3 + $0x48] sm:$0xff] }
 0x309   : > { %1127 = vst.msk [vmem:[#allocation3 + $0x58] sm:$0xff] %vm295_vm1, %v1110_v24  ;;  %1616 = vperm.xlu1 %2021, %v2163_v13   ;;  %2168 = vrcp.f32 %v1545_v58 }
 0x30b   : > { %v1089_v25 = vpop.xlane.xlu0 %1088 }
 0x30c   : > { %v1111_v3 = vadd.f32 %v1089_v25, %v1047_v14 }
 0x30d   : > { %v2165_v60 = vpop.eup %2164  ;;  %v1092_v0 = vpop.xlane.xlu1 %1091  ;;  %v1546_v57 = vld [vmem:[#allocation3 + $0x50] sm:$0xff] }
 0x30e   : > { %1128 = vst.msk [vmem:[#allocation3 + $0x60] sm:$0xff] %vm295_vm1, %v1111_v3  ;;  %1621 = vperm.xlu0 %2020, %v2165_v60   ;;  %v1112_v59 = vadd.f32 %v1092_v0, %v1048_v33  ;;  %2170 = vrcp.f32 %v1546_v57 }
 0x310   : > { %v2167_v18 = vpop.eup %2166  ;;  %1129 = vst.msk [vmem:[#allocation3 + $0x68] sm:$0xff] %vm295_vm1, %v1112_v59  ;;  %v1547_v23 = vld [vmem:[#allocation3 + $0x58] sm:$0xff]  ;;  %v1138_v59 = vld [vmem:[#allocation4 + $0x30] sm:$0xff] }
 0x311   : > { %1626 = vperm.xlu1 %2021, %v2167_v18   ;;  %2172 = vrcp.f32 %v1547_v23  ;;  %v1139_v23 = vld [vmem:[#allocation4 + $0x38] sm:$0xff] }
 0x313   : > { %v2169_v38 = vpop.eup %2168  ;;  %v1095_v34 = vpop.xlane.xlu0 %1094 }
 0x314   : > { %v1113_v26 = vadd.f32 %v1095_v34, %v1049_v11  ;;  %1631 = vperm.xlu0 %2020, %v2169_v38  }
 0x315   : > { %v1098_v5 = vpop.xlane.xlu1 %1097  ;;  %v1548_v48 = vld [vmem:[#allocation3 + $0x60] sm:$0xff] }
 0x316   : > { %1130 = vst.msk [vmem:[#allocation3 + $0x70] sm:$0xff] %vm295_vm1, %v1113_v26  ;;  %v1114_v55 = vadd.f32 %v1098_v5, %v1050_v51  ;;  %2174 = vrcp.f32 %v1548_v48 }
 0x317   : > { %v1549_v63 = vld [vmem:[#allocation3 + $0x68] sm:$0xff] }
 0x318   : > { %v2171_v16 = vpop.eup %2170  ;;  %1131 = vst.msk [vmem:[#allocation3 + $0x78] sm:$0xff] %vm295_vm1, %v1114_v55  ;;  %2176 = vrcp.f32 %v1549_v63 }
 0x319   : > { %1636 = vperm.xlu1 %2021, %v2171_v16   ;;  %v1156_v53 = vpop.permute.xlu1 %1155  ;;  %v1140_v16 = vld [vmem:[#allocation4 + $0x40] sm:$0xff] }
 0x31a   : > { %v1229_v31 = vmul.f32 %v1156_v53, %v1133_v44 }
 0x31b   : > { %v2173_v62 = vpop.eup %2172  ;;  %v1151_v40 = vpop.permute.xlu0 %1150 }
 0x31c   : > { %1641 = vperm.xlu0 %2020, %v2173_v62   ;;  %v1228_v43 = vmul.f32 %v1151_v40, %v1132_v30 }
 0x31d   : > { %v1550_v19 = vld [vmem:[#allocation3 + $0x70] sm:$0xff]  ;;  %v1161_v61 = vpop.permute.xlu1 %1160 }
 0x31e   : > { %2178 = vrcp.f32 %v1550_v19  ;;  %v1230_v20 = vmul.f32 %v1161_v61, %v1134_v8 }
 0x31f   : > { %v1551_v39 = vld [vmem:[#allocation3 + $0x78] sm:$0xff]  ;;  %v1166_v4 = vpop.permute.xlu0 %1165 }
 0x320   : > { %v2175_v12 = vpop.eup %2174  ;;  %2180 = vrcp.f32 %v1551_v39  ;;  %v1231_v47 = vmul.f32 %v1166_v4, %v1135_v54  ;;  %v1141_v39 = vld [vmem:[#allocation4 + $0x48] sm:$0xff] }
 0x321   : > { %1646 = vperm.xlu1 %2021, %v2175_v12   ;;  %v1171_v22 = vpop.permute.xlu1 %1170 }
 0x322   : > { %v2177_v35 = vpop.eup %2176  ;;  %v1232_v50 = vmul.f32 %v1171_v22, %v1136_v1 }
 0x323   : > { %1651 = vperm.xlu0 %2020, %v2177_v35   ;;  %v1176_v13 = vpop.permute.xlu0 %1175 }
 0x324   : > { %v1233_v33 = vmul.f32 %v1176_v13, %v1137_v2 }
 0x325   : > { %v1181_v6 = vpop.permute.xlu1 %1180 }
 0x326   : > { %v1937_v27 = vpop.f32.mrb[0].mxu1  ;;  %v1234_v38 = vmul.f32 %v1181_v6, %v1138_v59 }
 0x327   : > { %v1938_v28 = vpop.f32.mrb[1].mxu1  ;;  %v1186_v32 = vpop.permute.xlu0 %1185 }
 0x328   : > { %v2179_v41 = vpop.eup %2178  ;;  %v1939_v15 = vadd.f32 %v1938_v28, %v1937_v27  ;;  %v1940_v52 = vpop.f32.mrb[2].mxu1  ;;  %v1235_v5 = vmul.f32 %v1186_v32, %v1139_v23 }
 0x329   : > { %v1941_v17 = vpop.f32.mrb[3].mxu1  ;;  %1656 = vperm.xlu1 %2021, %v2179_v41   ;;  %v1191_v62 = vpop.permute.xlu1 %1190 }
 0x32a   : > { %v2181_v29 = vpop.eup %2180  ;;  %v1485_v36 = vadd.f32 %v1939_v15, %v1228_v43  ;;  %v1942_v42 = vadd.f32 %v1941_v17, %v1940_v52  ;;  %v1236_v30 = vmul.f32 %v1191_v62, %v1140_v16  ;;  %v1142_v15 = vld [vmem:[#allocation4 + $0x50] sm:$0xff] }
 0x32b   : > { %1661 = vperm.xlu0 %2020, %v2181_v29   ;;  %v1196_v12 = vpop.permute.xlu0 %1195  ;;  %v1143_v29 = vld [vmem:[#allocation4 + $0x58] sm:$0xff] }
 0x32c   : > { %1501 = vst.msk [vmem:[#allocation4] sm:$0xff] %vm328_vm0, %v1485_v36  ;;  %v1486_v7 = vadd.f32 %v1942_v42, %v1229_v31  ;;  %v1237_v53 = vmul.f32 %v1196_v12, %v1141_v39 }
 0x32d   : > { %v1201_v52 = vpop.permute.xlu1 %1200 }
 0x32e   : > { %1502 = vst.msk [vmem:[#allocation4 + $0x8] sm:$0xff] %vm328_vm0, %v1486_v7  ;;  %v1943_v10 = vpop.f32.mrb[4].mxu1  ;;  %v1238_v42 = vmul.f32 %v1201_v52, %v1142_v15 }
 0x32f   : > { %v1944_v45 = vpop.f32.mrb[5].mxu1  ;;  %v1206_v31 = vpop.permute.xlu0 %1205 }
 0x330   : > { %v1945_v46 = vadd.f32 %v1944_v45, %v1943_v10  ;;  %v1946_v9 = vpop.f32.mrb[6].mxu1  ;;  %v1239_v10 = vmul.f32 %v1206_v31, %v1143_v29 }
 0x331   : > { %v1947_v21 = vpop.f32.mrb[7].mxu1 }
 0x332   : > { %v1487_v37 = vadd.f32 %v1945_v46, %v1230_v20  ;;  %v1948_v49 = vadd.f32 %v1947_v21, %v1946_v9  ;;  %v1144_v20 = vld [vmem:[#allocation4 + $0x60] sm:$0xff]  ;;  %v1211_v46 = vpop.permute.xlu1 %1210  ;;  %v1145_v21 = vld [vmem:[#allocation4 + $0x68] sm:$0xff] }
 0x334   : > { %1503 = vst.msk [vmem:[#allocation4 + $0x10] sm:$0xff] %vm328_vm0, %v1487_v37  ;;  %v1488_v56 = vadd.f32 %v1948_v49, %v1231_v47  ;;  %v1216_v47 = vpop.permute.xlu0 %1215  ;;  %v1240_v49 = vmul.f32 %v1211_v46, %v1144_v20 }
 0x336   : > { %1504 = vst.msk [vmem:[#allocation4 + $0x18] sm:$0xff] %vm328_vm0, %v1488_v56  ;;  %v1949_v24 = vpop.f32.mrb[8].mxu1 }
 0x337   : > { %v1950_v58 = vpop.f32.mrb[9].mxu1 }
 0x338   : > { %v1951_v14 = vadd.f32 %v1950_v58, %v1949_v24  ;;  %v1952_v25 = vpop.f32.mrb[10].mxu1  ;;  %v1241_v24 = vmul.f32 %v1216_v47, %v1145_v21 }
 0x339   : > { %v1953_v3 = vpop.f32.mrb[11].mxu1 }
 0x33a   : > { %v1489_v60 = vadd.f32 %v1951_v14, %v1232_v50  ;;  %v1954_v0 = vadd.f32 %v1953_v3, %v1952_v25  ;;  %v1146_v50 = vld [vmem:[#allocation4 + $0x70] sm:$0xff]  ;;  %v1221_v14 = vpop.permute.xlu1 %1220  ;;  %v1147_v3 = vld [vmem:[#allocation4 + $0x78] sm:$0xff] }
 0x33c   : > { %1505 = vst.msk [vmem:[#allocation4 + $0x20] sm:$0xff] %vm328_vm0, %v1489_v60  ;;  %v1490_v57 = vadd.f32 %v1954_v0, %v1233_v33  ;;  %v1226_v33 = vpop.permute.xlu0 %1225  ;;  %v1242_v0 = vmul.f32 %v1221_v14, %v1146_v50 }
 0x33d   : > { %v1571_v62 = vld [vmem:[#allocation4 + $0x18] sm:$0xff] }
 0x33e   : > { %1506 = vst.msk [vmem:[#allocation4 + $0x28] sm:$0xff] %vm328_vm0, %v1490_v57  ;;  %v1955_v18 = vpop.f32.mrb[12].mxu1 }
 0x33f   : > { %v1956_v11 = vpop.f32.mrb[13].mxu1 }
 0x340   : > { %v1957_v34 = vadd.f32 %v1956_v11, %v1955_v18  ;;  %v1958_v26 = vpop.f32.mrb[14].mxu1  ;;  %v1243_v18 = vmul.f32 %v1226_v33, %v1147_v3 }
 0x341   : > { %v1959_v51 = vpop.f32.mrb[15].mxu1 }
 0x342   : > { %v1491_v48 = vadd.f32 %v1957_v34, %v1234_v38  ;;  %v1960_v55 = vadd.f32 %v1959_v51, %v1958_v26  ;;  %v1568_v38 = vld [vmem:[#allocation4] sm:$0xff] }
 0x343   : > { %v1572_v12 = vld [vmem:[#allocation4 + $0x20] sm:$0xff] }
 0x344   : > { %1507 = vst.msk [vmem:[#allocation4 + $0x30] sm:$0xff] %vm328_vm0, %v1491_v48  ;;  %v1492_v63 = vadd.f32 %v1960_v55, %v1235_v5  ;;  %v1569_v5 = vld [vmem:[#allocation4 + $0x8] sm:$0xff]  ;;  %v1570_v55 = vld [vmem:[#allocation4 + $0x10] sm:$0xff] }
 0x346   : > { %1508 = vst.msk [vmem:[#allocation4 + $0x38] sm:$0xff] %vm328_vm0, %v1492_v63  ;;  %v1961_v19 = vpop.f32.mrb[16].mxu1 }
 0x347   : > { %v1962_v35 = vpop.f32.mrb[17].mxu1 }
 0x348   : > { %v1963_v40 = vadd.f32 %v1962_v35, %v1961_v19  ;;  %v1964_v27 = vpop.f32.mrb[18].mxu1 }
 0x349   : > { %v1965_v44 = vpop.f32.mrb[19].mxu1 }
 0x34a   : > { %v1493_v28 = vadd.f32 %v1963_v40, %v1236_v30  ;;  %v1966_v41 = vadd.f32 %v1965_v44, %v1964_v27  ;;  %v1573_v40 = vld [vmem:[#allocation4 + $0x28] sm:$0xff] }
 0x34c   : > { %1509 = vst.msk [vmem:[#allocation4 + $0x40] sm:$0xff] %vm328_vm0, %v1493_v28  ;;  %v1494_v43 = vadd.f32 %v1966_v41, %v1237_v53  ;;  %v1574_v53 = vld [vmem:[#allocation4 + $0x30] sm:$0xff] }
 0x34e   : > { %1510 = vst.msk [vmem:[#allocation4 + $0x48] sm:$0xff] %vm328_vm0, %v1494_v43  ;;  %v1967_v17 = vpop.f32.mrb[20].mxu1  ;;  %v1575_v43 = vld [vmem:[#allocation4 + $0x38] sm:$0xff] }
 0x34f   : > { %v1968_v36 = vpop.f32.mrb[21].mxu1 }
 0x350   : > { %v1969_v7 = vadd.f32 %v1968_v36, %v1967_v17  ;;  %v1970_v8 = vpop.f32.mrb[22].mxu1 }
 0x351   : > { %v1971_v61 = vpop.f32.mrb[23].mxu1 }
 0x352   : > { %v1495_v54 = vadd.f32 %v1969_v7, %v1238_v42  ;;  %v1972_v4 = vadd.f32 %v1971_v61, %v1970_v8 }
 0x353   : > { %v1576_v17 = vld [vmem:[#allocation4 + $0x40] sm:$0xff] }
 0x354   : > { %1511 = vst.msk [vmem:[#allocation4 + $0x50] sm:$0xff] %vm328_vm0, %v1495_v54  ;;  %v1496_v45 = vadd.f32 %v1972_v4, %v1239_v10 }
 0x355   : > { %v1577_v36 = vld [vmem:[#allocation4 + $0x48] sm:$0xff] }
 0x356   : > { %1512 = vst.msk [vmem:[#allocation4 + $0x58] sm:$0xff] %vm328_vm0, %v1496_v45  ;;  %v1973_v9 = vpop.f32.mrb[24].mxu1 }
 0x357   : > { %v1974_v37 = vpop.f32.mrb[25].mxu1 }
 0x358   : > { %v1975_v56 = vadd.f32 %v1974_v37, %v1973_v9  ;;  %v1976_v1 = vpop.f32.mrb[26].mxu1 }
 0x359   : > { %v1977_v22 = vpop.f32.mrb[27].mxu1 }
 0x35a   : > { %v1497_v2 = vadd.f32 %v1975_v56, %v1240_v49  ;;  %v1978_v13 = vadd.f32 %v1977_v22, %v1976_v1 }
 0x35b   : > { %v1578_v8 = vld [vmem:[#allocation4 + $0x50] sm:$0xff] }
 0x35c   : > { %1513 = vst.msk [vmem:[#allocation4 + $0x60] sm:$0xff] %vm328_vm0, %v1497_v2  ;;  %v1498_v58 = vadd.f32 %v1978_v13, %v1241_v24 }
 0x35d   : > { %v1579_v54 = vld [vmem:[#allocation4 + $0x58] sm:$0xff] }
 0x35e   : > { %1514 = vst.msk [vmem:[#allocation4 + $0x68] sm:$0xff] %vm328_vm0, %v1498_v58  ;;  %v1979_v25 = vpop.f32.mrb[28].mxu1 }
 0x35f   : > { %v1980_v60 = vpop.f32.mrb[29].mxu1 }
 0x360   : > { %v1981_v57 = vadd.f32 %v1980_v60, %v1979_v25  ;;  %v1982_v59 = vpop.f32.mrb[30].mxu1 }
 0x361   : > { %v1983_v6 = vpop.f32.mrb[31].mxu1 }
 0x362   : > { %v1499_v23 = vadd.f32 %v1981_v57, %v1242_v0  ;;  %v1984_v32 = vadd.f32 %v1983_v6, %v1982_v59 }
 0x363   : > { %v1580_v20 = vld [vmem:[#allocation4 + $0x60] sm:$0xff] }
 0x364   : > { %1515 = vst.msk [vmem:[#allocation4 + $0x70] sm:$0xff] %vm328_vm0, %v1499_v23  ;;  %v1500_v11 = vadd.f32 %v1984_v32, %v1243_v18 }
 0x365   : > { %v1581_v21 = vld [vmem:[#allocation4 + $0x68] sm:$0xff] }
 0x366   : > { %1516 = vst.msk [vmem:[#allocation4 + $0x78] sm:$0xff] %vm328_vm0, %v1500_v11 }
 0x36b   : > { %v1582_v49 = vld [vmem:[#allocation4 + $0x70] sm:$0xff] }
 0x36d   : > { %v1583_v22 = vld [vmem:[#allocation4 + $0x78] sm:$0xff] }
 0x370   : > { %v1587_v34 = vpop.permute.xlu1 %1586 }
 0x371   : > { %v1664_v26 = vmul.f32 %v1587_v34, %v1568_v38 }
 0x373   : > { %1680 = vst.msk [vmem:[%s2806_s29] sm:$0xff] %vm328_vm0, %v1664_v26 }
 0x375   : > { %v1592_v51 = vpop.permute.xlu0 %1591 }
 0x376   : > { %v1665_v48 = vmul.f32 %v1592_v51, %v1569_v5 }
 0x378   : > { %1681 = vst.msk [vmem:[%s2806_s29 + $0x8] sm:$0xff] %vm328_vm0, %v1665_v48 }
 0x379   : > { %v1597_v63 = vpop.permute.xlu1 %1596 }
 0x37a   : > { %v1666_v16 = vmul.f32 %v1597_v63, %v1570_v55 }
 0x37c   : > { %1682 = vst.msk [vmem:[%s2806_s29 + $0x10] sm:$0xff] %vm328_vm0, %v1666_v16 }
 0x37d   : > { %v1602_v19 = vpop.permute.xlu0 %1601 }
 0x37e   : > { %v1667_v39 = vmul.f32 %v1602_v19, %v1571_v62 }
 0x380   : > { %1683 = vst.msk [vmem:[%s2806_s29 + $0x18] sm:$0xff] %vm328_vm0, %v1667_v39  ;;  %v1607_v35 = vpop.permute.xlu1 %1606 }
 0x381   : > { %v1668_v30 = vmul.f32 %v1607_v35, %v1572_v12 }
 0x383   : > { %1684 = vst.msk [vmem:[%s2806_s29 + $0x20] sm:$0xff] %vm328_vm0, %v1668_v30 }
 0x385   : > { %v1612_v27 = vpop.permute.xlu0 %1611 }
 0x386   : > { %v1669_v44 = vmul.f32 %v1612_v27, %v1573_v40 }
 0x388   : > { %1685 = vst.msk [vmem:[%s2806_s29 + $0x28] sm:$0xff] %vm328_vm0, %v1669_v44  ;;  %v1617_v28 = vpop.permute.xlu1 %1616 }
 0x389   : > { %v1670_v41 = vmul.f32 %v1617_v28, %v1574_v53 }
 0x38b   : > { %1686 = vst.msk [vmem:[%s2806_s29 + $0x30] sm:$0xff] %vm328_vm0, %v1670_v41 }
 0x38d   : > { %v1622_v15 = vpop.permute.xlu0 %1621 }
 0x38e   : > { %v1671_v52 = vmul.f32 %v1622_v15, %v1575_v43 }
 0x390   : > { %1687 = vst.msk [vmem:[%s2806_s29 + $0x38] sm:$0xff] %vm328_vm0, %v1671_v52  ;;  %v1627_v29 = vpop.permute.xlu1 %1626 }
 0x391   : > { %v1672_v31 = vmul.f32 %v1627_v29, %v1576_v17 }
 0x393   : > { %1688 = vst.msk [vmem:[%s2806_s29 + $0x40] sm:$0xff] %vm328_vm0, %v1672_v31  ;;  %v1632_v42 = vpop.permute.xlu0 %1631 }
 0x394   : > { %v1673_v7 = vmul.f32 %v1632_v42, %v1577_v36 }
 0x396   : > { %1689 = vst.msk [vmem:[%s2806_s29 + $0x48] sm:$0xff] %vm328_vm0, %v1673_v7 }
 0x398   : > { %v1637_v61 = vpop.permute.xlu1 %1636 }
 0x399   : > { %v1674_v10 = vmul.f32 %v1637_v61, %v1578_v8 }
 0x39b   : > { %1690 = vst.msk [vmem:[%s2806_s29 + $0x50] sm:$0xff] %vm328_vm0, %v1674_v10  ;;  %v1642_v4 = vpop.permute.xlu0 %1641 }
 0x39c   : > { %v1675_v45 = vmul.f32 %v1642_v4, %v1579_v54 }
 0x39e   : > { %1691 = vst.msk [vmem:[%s2806_s29 + $0x58] sm:$0xff] %vm328_vm0, %v1675_v45 }
 0x3a0   : > { %v1647_v46 = vpop.permute.xlu1 %1646 }
 0x3a1   : > { %v1676_v9 = vmul.f32 %v1647_v46, %v1580_v20 }
 0x3a2   : > { %v1652_v47 = vpop.permute.xlu0 %1651 }
 0x3a3   : > { %1692 = vst.msk [vmem:[%s2806_s29 + $0x60] sm:$0xff] %vm328_vm0, %v1676_v9  ;;  %v1677_v37 = vmul.f32 %v1652_v47, %v1581_v21 }
 0x3a5   : > { %1693 = vst.msk [vmem:[%s2806_s29 + $0x68] sm:$0xff] %vm328_vm0, %v1677_v37 }
 0x3a8   : > { %v1657_v56 = vpop.permute.xlu1 %1656 }
 0x3a9   : > { %v1678_v1 = vmul.f32 %v1657_v56, %v1582_v49 }
 0x3aa   : > { %v1662_v24 = vpop.permute.xlu0 %1661 }
 0x3ab   : > { %1694 = vst.msk [vmem:[%s2806_s29 + $0x70] sm:$0xff] %vm328_vm0, %v1678_v1  ;;  %v1679_v2 = vmul.f32 %v1662_v24, %v1583_v22 }
 0x3ad   : > { %1695 = vst.msk [vmem:[%s2806_s29 + $0x78] sm:$0xff] %vm328_vm0, %v1679_v2 }
 0x3ae PF: > { %s13_s14 = sadd.s32 1, %s2204_s14   ;;  %s2908_s12 = smov %s2200_s13 }
 0x3af   : > { %p10_p5 = scmp.ge.s32.totalorder %s13_s14, 4   ;;  %s2909_s13 = smov %s2911_s15 }
 0x3b1   :  { %12 = sbr.rel (!%p10_p5) target bundleno = 2 (0x2), region = 76 }

</bundles_post_ra>
